<compile_context>
chip_gen: v7x
topology: tpu7x:2x2x1
jax: 0.10.0
libtpu: 0.0.40
codegen_flags: <defaults>
</compile_context>

<pallas_src>
import functools

import jax
import jax.numpy as jnp
from jax import lax
from jax.experimental import pallas as pl
from jax.experimental.pallas import tpu as pltpu

H1, H2, H3 = 512, 256, 64


def _round_up(n, m):
    return ((n + m - 1) // m) * m


def _use_bf16_epilogue():
    """bf16 VALU exists on v6e/v7x; v2-v5 keep the bias+ReLU epilogue in f32."""
    try:
        kind = jax.devices()[0].device_kind.lower()
    except Exception:
        return True
    return not any(tag in kind for tag in ("v2", "v3", "v4", "v5"))


def _choose_tiling(batch, tile_b_max):
    """Pad batch to a multiple of 128 (lane width) and pick a batch tile that
    divides the padded size exactly (padding waste <= 127 rows).  Prefer
    >= 2 grid steps (v7x megacore) and tiles up to tile_b_max to amortize the
    fixed per-grid-step pipeline overhead."""
    b_pad = _round_up(max(batch, 1), 128)
    nb = b_pad // 128                       # number of 128-row blocks
    max_blocks = max(tile_b_max // 128, 1)
    min_tiles = 2 if nb >= 2 else 1
    best = 1
    for cand in range(1, min(max_blocks, nb) + 1):
        if nb % cand == 0 and nb // cand >= min_tiles:
            best = cand
    if best == 1 and nb > 2 * max_blocks:
        # nb has no useful divisor (e.g. prime): accept a ragged-pad tiling
        # instead of hundreds of tiny grid steps.
        best = max_blocks
        b_pad = _round_up(b_pad, best * 128)
    tile_b = best * 128
    return b_pad, tile_b


def _bias_relu(h_f32, bias_bf16, bf16_epilogue):
    """Bias + ReLU epilogue; returns bf16 (input dtype of the next matmul)."""
    if bf16_epilogue:
        # v6e/v7x: cast first, then add+max on bf16 vregs (half the VALU work).
        h = h_f32.astype(jnp.bfloat16)
        return jnp.maximum(h + bias_bf16, 0.0)
    # v5e and older: no bf16 VPU path; stay in f32, cast once at the end.
    h = jnp.maximum(h_f32 + bias_bf16.astype(jnp.float32), 0.0)
    return h.astype(jnp.bfloat16)


def _mlp_kernel(x_ref, w1_ref, b1_ref, w2_ref, b2_ref, w3_ref, b3_ref,
                w4_ref, b4_ref, o_ref, *, bf16_epilogue):
    # x_ref: [TILE_B, K] f32 (natural layout); weights bf16 [out, in];
    # w4 bf16 [64, 1]; biases bf16 [out, 1]; o_ref [1, TILE_B] f32.
    x = x_ref[...].astype(jnp.bfloat16)

    # Layer 1: Linear(K, 512) + ReLU.  Contract the last dims of w1 and x
    # (i.e. w1 @ x^T) so batch moves onto the lane axis in-kernel -- no
    # wrapper-side HBM transpose of x.  (Dropout is identity in eval.)
    h = lax.dot_general(w1_ref[...], x, (((1,), (1,)), ((), ())),
                        preferred_element_type=jnp.float32)     # [H1, TILE_B]
    h = _bias_relu(h, b1_ref[...], bf16_epilogue)

    # Layer 2: Linear(512, 256) + ReLU
    h = jnp.dot(w2_ref[...], h, preferred_element_type=jnp.float32)
    h = _bias_relu(h, b2_ref[...], bf16_epilogue)

    # Layer 3: Linear(256, 64) + ReLU -- keep f32, it feeds the f32 reduce.
    h = jnp.dot(w3_ref[...], h, preferred_element_type=jnp.float32)
    h = jnp.maximum(h + b3_ref[...].astype(jnp.float32), 0.0)   # [H3, TILE_B]

    # Layer 4: Linear(64, 1) as VPU multiply + sublane reduce (MXU stays
    # free), producing a lane-dense [1, TILE_B] row.
    w4 = w4_ref[...].astype(jnp.float32)                        # [64, 1]
    o_ref[...] = (jnp.sum(h * w4, axis=0, keepdims=True)
                  + b4_ref[...].astype(jnp.float32))


@functools.partial(jax.jit, static_argnames=("tile_b_max",))
def baseline_nn_forward(x, params, tile_b_max=2048):
    """x: [B, input_dim] float32. Returns [B] float32 (eval-mode forward)."""
    w1, b1, w2, b2, w3, b3, w4, b4 = params
    B, input_dim = x.shape

    b_pad, tile_b = _choose_tiling(B, tile_b_max)
    grid = (b_pad // tile_b,)

    if b_pad != B:
        x = jnp.pad(x, ((0, b_pad - B), (0, 0)))

    const = lambda i: (0, 0)   # weights/biases: constant block -> VMEM-resident
    in_specs = [
        pl.BlockSpec((tile_b, input_dim), lambda i: (i, 0)),    # x tile (natural)
        pl.BlockSpec((H1, input_dim), const),                   # w1
        pl.BlockSpec((H1, 1), const),                           # b1
        pl.BlockSpec((H2, H1), const),                          # w2
        pl.BlockSpec((H2, 1), const),                           # b2
        pl.BlockSpec((H3, H2), const),                          # w3
        pl.BlockSpec((H3, 1), const),                           # b3
        pl.BlockSpec((H3, 1), const),                           # w4 (column)
        pl.BlockSpec((1, 1), const),                            # b4
    ]
    out_spec = pl.BlockSpec((1, tile_b), lambda i: (0, i))

    bf16_epilogue = _use_bf16_epilogue()

    flops = 2 * b_pad * (input_dim * H1 + H1 * H2 + H2 * H3 + H3)
    param_bytes = sum(int(p.size) * jnp.dtype(p.dtype).itemsize for p in params)
    bytes_accessed = int(b_pad * input_dim * 4 + param_bytes + b_pad * 4)

    # Rough VMEM budget: double-buffered x & out, resident (double-buffered)
    # weights, f32/bf16 activation tiles; 2x headroom, capped under the v7x
    # 64 MiB physical VMEM (v5e's 16 MiB scoped default is too small for
    # large tiles / large input_dim).
    est = (2 * tile_b * input_dim * 4 + 2 * tile_b * 4 + 2 * param_bytes
           + tile_b * (6 * H1 + 6 * H2 + 4 * H3 + 2 * input_dim))
    vmem_limit = int(min(48 << 20, max(32 << 20, 2 * est)))

    kernel = functools.partial(_mlp_kernel, bf16_epilogue=bf16_epilogue)

    out = pl.pallas_call(
        kernel,
        out_shape=jax.ShapeDtypeStruct((1, b_pad), jnp.float32),
        grid=grid,
        in_specs=in_specs,
        out_specs=out_spec,
        compiler_params=pltpu.CompilerParams(
            dimension_semantics=("parallel",),
            vmem_limit_bytes=vmem_limit),
        cost_estimate=pl.CostEstimate(
            flops=flops, transcendentals=0, bytes_accessed=bytes_accessed),
    )(x, w1, b1, w2, b2, w3, b3, w4, b4)
    return out[0, :B]


def init_params(key, input_dim):
    """Deterministic PyTorch-Linear-style uniform init.
    Weights stored bf16 in [out, in] layout (last layer as a [64, 1] column
    for the in-kernel sublane reduce); biases bf16 as [out, 1] columns."""
    dims = [(input_dim, H1), (H1, H2), (H2, H3), (H3, 1)]
    params = []
    for idx, (fan_in, fan_out) in enumerate(dims):
        key, kw, kb = jax.random.split(key, 3)
        bound = 1.0 / float(fan_in) ** 0.5
        if idx < 3:
            w = jax.random.uniform(kw, (fan_out, fan_in), jnp.float32,
                                   -bound, bound)
        else:  # last layer kept as [in, 1] column
            w = jax.random.uniform(kw, (fan_in, fan_out), jnp.float32,
                                   -bound, bound)
        b = jax.random.uniform(kb, (fan_out, 1), jnp.float32, -bound, bound)
        params += [w.astype(jnp.bfloat16), b.astype(jnp.bfloat16)]
    return params


def ref_forward(x, params, bf16_epilogue=None):
    """Plain-JAX reference mirroring the kernel's numeric scheme
    (bf16 operands, f32 accumulation, same epilogue precision)."""
    if bf16_epilogue is None:
        bf16_epilogue = _use_bf16_epilogue()
    w1, b1, w2, b2, w3, b3, w4, b4 = params

    def layer(h, w, b):
        a = lax.dot_general(h, w, (((1,), (1,)), ((), ())),
                            preferred_element_type=jnp.float32)  # [B, out]
        if bf16_epilogue:
            return jnp.maximum(a.astype(jnp.bfloat16) + b.T, 0.0)
        return jnp.maximum(a + b.T.astype(jnp.float32), 0.0).astype(jnp.bfloat16)

    h = x.astype(jnp.bfloat16)
    h = layer(h, w1, b1)
    h = layer(h, w2, b2)
    a = lax.dot_general(h, w3, (((1,), (1,)), ((), ())),
                        preferred_element_type=jnp.float32)
    h3 = jnp.maximum(a + b3.T.astype(jnp.float32), 0.0)          # [B, 64] f32
    w4f = w4.astype(jnp.float32)[:, 0]
    return jnp.sum(h3 * w4f[None, :], axis=-1) + b4.astype(jnp.float32)[0, 0]


if __name__ == "__main__":
    key = jax.random.PRNGKey(0)
    B, input_dim = 8, 32

    key, kx = jax.random.split(key)
    # Module does x.view(x.size(0), -1); we construct the flattened input.
    x = jax.random.normal(kx, (B, input_dim), jnp.float32)

    params = init_params(key, input_dim)

    y = baseline_nn_forward(x, params)
    jax.block_until_ready(y)

    y_ref = ref_forward(x, params)
    assert y.shape == (B,)
    assert jnp.allclose(y, y_ref, atol=1e-2, rtol=1e-2), (y, y_ref)

    print("KERNEL_OK")
</pallas_src>

<mosaic_0001>
module attributes {stable_mosaic.version = 11 : i64} {
  func.func @_mlp_kernel(%arg0: i32, %arg1: memref<128x32xf32, #tpu.memory_space<vmem>>, %arg2: memref<512x32xbf16, #tpu.memory_space<vmem>>, %arg3: memref<512x1xbf16, #tpu.memory_space<vmem>>, %arg4: memref<256x512xbf16, #tpu.memory_space<vmem>>, %arg5: memref<256x1xbf16, #tpu.memory_space<vmem>>, %arg6: memref<64x256xbf16, #tpu.memory_space<vmem>>, %arg7: memref<64x1xbf16, #tpu.memory_space<vmem>>, %arg8: memref<64x1xbf16, #tpu.memory_space<vmem>>, %arg9: memref<1x1xbf16, #tpu.memory_space<vmem>>, %arg10: memref<1x128xf32, #tpu.memory_space<vmem>>) attributes {dimension_semantics = [#tpu.dimension_semantics<parallel>], iteration_bounds = array<i64: 1>, scalar_prefetch = 0 : i64, scratch_operands = 0 : i64, tpu.core_type = #tpu.core_type<tc>, window_params = [{transform_indices = @transform_0, window_bounds = array<i64: 128, 32>}, {pipeline_mode = #tpu.pipeline_mode<synchronous>, transform_indices = @transform_1, window_bounds = array<i64: 512, 32>}, {pipeline_mode = #tpu.pipeline_mode<synchronous>, transform_indices = @transform_2, window_bounds = array<i64: 512, 1>}, {pipeline_mode = #tpu.pipeline_mode<synchronous>, transform_indices = @transform_3, window_bounds = array<i64: 256, 512>}, {pipeline_mode = #tpu.pipeline_mode<synchronous>, transform_indices = @transform_4, window_bounds = array<i64: 256, 1>}, {pipeline_mode = #tpu.pipeline_mode<synchronous>, transform_indices = @transform_5, window_bounds = array<i64: 64, 256>}, {pipeline_mode = #tpu.pipeline_mode<synchronous>, transform_indices = @transform_6, window_bounds = array<i64: 64, 1>}, {pipeline_mode = #tpu.pipeline_mode<synchronous>, transform_indices = @transform_7, window_bounds = array<i64: 64, 1>}, {pipeline_mode = #tpu.pipeline_mode<synchronous>, transform_indices = @transform_8, window_bounds = array<i64: 1, 1>}, {transform_indices = @transform_9, window_bounds = array<i64: 1, 128>}]} {
    %c0 = arith.constant 0 : index
    %c0_0 = arith.constant 0 : index
    %0 = vector.load %arg1[%c0, %c0_0] : memref<128x32xf32, #tpu.memory_space<vmem>>, vector<128x32xf32>
    %1 = arith.truncf %0 : vector<128x32xf32> to vector<128x32xbf16>
    %c0_1 = arith.constant 0 : index
    %c0_2 = arith.constant 0 : index
    %2 = vector.load %arg2[%c0_1, %c0_2] : memref<512x32xbf16, #tpu.memory_space<vmem>>, vector<512x32xbf16>
    %cst = arith.constant dense<0.000000e+00> : vector<512x128xf32>
    %3 = tpu.matmul %2, %1, %cst {dimension_numbers = #tpu.dot_dimension_numbers<[1], [1], [0], [0], [0, 0, 1, 0], [], []>} : vector<512x32xbf16>, vector<128x32xbf16>, vector<512x128xf32> -> vector<512x128xf32>
    %c0_3 = arith.constant 0 : index
    %c0_4 = arith.constant 0 : index
    %4 = vector.load %arg3[%c0_3, %c0_4] : memref<512x1xbf16, #tpu.memory_space<vmem>>, vector<512x1xbf16>
    %5 = arith.truncf %3 : vector<512x128xf32> to vector<512x128xbf16>
    %6 = vector.broadcast %4 : vector<512x1xbf16> to vector<512x128xbf16>
    %7 = arith.addf %5, %6 : vector<512x128xbf16>
    %cst_5 = arith.constant 0.000000e+00 : bf16
    %8 = vector.broadcast %cst_5 : bf16 to vector<512x128xbf16>
    %9 = arith.maximumf %7, %8 : vector<512x128xbf16>
    %c0_6 = arith.constant 0 : index
    %c0_7 = arith.constant 0 : index
    %10 = vector.load %arg4[%c0_6, %c0_7] : memref<256x512xbf16, #tpu.memory_space<vmem>>, vector<256x512xbf16>
    %cst_8 = arith.constant dense<0.000000e+00> : vector<256x128xf32>
    %11 = tpu.matmul %10, %9, %cst_8 {dimension_numbers = #tpu.dot_dimension_numbers<[1], [0], [0], [1], [0, 0, 1, 1], [], []>} : vector<256x512xbf16>, vector<512x128xbf16>, vector<256x128xf32> -> vector<256x128xf32>
    %c0_9 = arith.constant 0 : index
    %c0_10 = arith.constant 0 : index
    %12 = vector.load %arg5[%c0_9, %c0_10] : memref<256x1xbf16, #tpu.memory_space<vmem>>, vector<256x1xbf16>
    %13 = arith.truncf %11 : vector<256x128xf32> to vector<256x128xbf16>
    %14 = vector.broadcast %12 : vector<256x1xbf16> to vector<256x128xbf16>
    %15 = arith.addf %13, %14 : vector<256x128xbf16>
    %cst_11 = arith.constant 0.000000e+00 : bf16
    %16 = vector.broadcast %cst_11 : bf16 to vector<256x128xbf16>
    %17 = arith.maximumf %15, %16 : vector<256x128xbf16>
    %c0_12 = arith.constant 0 : index
    %c0_13 = arith.constant 0 : index
    %18 = vector.load %arg6[%c0_12, %c0_13] : memref<64x256xbf16, #tpu.memory_space<vmem>>, vector<64x256xbf16>
    %cst_14 = arith.constant dense<0.000000e+00> : vector<64x128xf32>
    %19 = tpu.matmul %18, %17, %cst_14 {dimension_numbers = #tpu.dot_dimension_numbers<[1], [0], [0], [1], [0, 0, 1, 1], [], []>} : vector<64x256xbf16>, vector<256x128xbf16>, vector<64x128xf32> -> vector<64x128xf32>
    %c0_15 = arith.constant 0 : index
    %c0_16 = arith.constant 0 : index
    %20 = vector.load %arg7[%c0_15, %c0_16] : memref<64x1xbf16, #tpu.memory_space<vmem>>, vector<64x1xbf16>
    %21 = arith.extf %20 : vector<64x1xbf16> to vector<64x1xf32>
    %22 = vector.broadcast %21 : vector<64x1xf32> to vector<64x128xf32>
    %23 = arith.addf %19, %22 : vector<64x128xf32>
    %cst_17 = arith.constant 0.000000e+00 : f32
    %24 = vector.broadcast %cst_17 : f32 to vector<64x128xf32>
    %25 = arith.maximumf %23, %24 : vector<64x128xf32>
    %c0_18 = arith.constant 0 : index
    %c0_19 = arith.constant 0 : index
    %26 = vector.load %arg8[%c0_18, %c0_19] : memref<64x1xbf16, #tpu.memory_space<vmem>>, vector<64x1xbf16>
    %27 = arith.extf %26 : vector<64x1xbf16> to vector<64x1xf32>
    %28 = vector.broadcast %27 : vector<64x1xf32> to vector<64x128xf32>
    %29 = arith.mulf %25, %28 : vector<64x128xf32>
    %cst_20 = arith.constant dense<0.000000e+00> : vector<128xf32>
    %30 = vector.multi_reduction <add>, %29, %cst_20 [0] : vector<64x128xf32> to vector<128xf32>
    %31 = vector.shape_cast %30 : vector<128xf32> to vector<1x128xf32>
    %c0_21 = arith.constant 0 : index
    %c0_22 = arith.constant 0 : index
    %32 = vector.load %arg9[%c0_21, %c0_22] : memref<1x1xbf16, #tpu.memory_space<vmem>>, vector<1x1xbf16>
    %33 = arith.extf %32 : vector<1x1xbf16> to vector<1x1xf32>
    %34 = vector.broadcast %33 : vector<1x1xf32> to vector<1x128xf32>
    %35 = arith.addf %31, %34 : vector<1x128xf32>
    %c0_23 = arith.constant 0 : index
    %c0_24 = arith.constant 0 : index
    %36 = vector.load %arg10[%c0_23, %c0_24] : memref<1x128xf32, #tpu.memory_space<vmem>>, vector<1x128xf32>
    tpu.vector_store %arg10[%c0_23, %c0_24], %35 {strides = array<i32>} : memref<1x128xf32, #tpu.memory_space<vmem>>, vector<1x128xf32>,
    return
  }
  func.func @transform_0(%arg0: i32) -> (i32, i32) {
    %c0_i32 = arith.constant 0 : i32
    %c0_i32_0 = arith.constant 0 : i32
    return %arg0, %c0_i32 : i32, i32
  }
  func.func @transform_1(%arg0: i32) -> (i32, i32) {
    %c0_i32 = arith.constant 0 : i32
    %c0_i32_0 = arith.constant 0 : i32
    %c0_i32_1 = arith.constant 0 : i32
    return %c0_i32, %c0_i32_0 : i32, i32
  }
  func.func @transform_2(%arg0: i32) -> (i32, i32) {
    %c0_i32 = arith.constant 0 : i32
    %c0_i32_0 = arith.constant 0 : i32
    %c0_i32_1 = arith.constant 0 : i32
    return %c0_i32, %c0_i32_0 : i32, i32
  }
  func.func @transform_3(%arg0: i32) -> (i32, i32) {
    %c0_i32 = arith.constant 0 : i32
    %c0_i32_0 = arith.constant 0 : i32
    %c0_i32_1 = arith.constant 0 : i32
    return %c0_i32, %c0_i32_0 : i32, i32
  }
  func.func @transform_4(%arg0: i32) -> (i32, i32) {
    %c0_i32 = arith.constant 0 : i32
    %c0_i32_0 = arith.constant 0 : i32
    %c0_i32_1 = arith.constant 0 : i32
    return %c0_i32, %c0_i32_0 : i32, i32
  }
  func.func @transform_5(%arg0: i32) -> (i32, i32) {
    %c0_i32 = arith.constant 0 : i32
    %c0_i32_0 = arith.constant 0 : i32
    %c0_i32_1 = arith.constant 0 : i32
    return %c0_i32, %c0_i32_0 : i32, i32
  }
  func.func @transform_6(%arg0: i32) -> (i32, i32) {
    %c0_i32 = arith.constant 0 : i32
    %c0_i32_0 = arith.constant 0 : i32
    %c0_i32_1 = arith.constant 0 : i32
    return %c0_i32, %c0_i32_0 : i32, i32
  }
  func.func @transform_7(%arg0: i32) -> (i32, i32) {
    %c0_i32 = arith.constant 0 : i32
    %c0_i32_0 = arith.constant 0 : i32
    %c0_i32_1 = arith.constant 0 : i32
    return %c0_i32, %c0_i32_0 : i32, i32
  }
  func.func @transform_8(%arg0: i32) -> (i32, i32) {
    %c0_i32 = arith.constant 0 : i32
    %c0_i32_0 = arith.constant 0 : i32
    %c0_i32_1 = arith.constant 0 : i32
    return %c0_i32, %c0_i32_0 : i32, i32
  }
  func.func @transform_9(%arg0: i32) -> (i32, i32) {
    %c0_i32 = arith.constant 0 : i32
    %c0_i32_0 = arith.constant 0 : i32
    return %c0_i32, %arg0 : i32, i32
  }
}

</mosaic_0001>

<bundles_post_ra>
// kernel: baseline_nn_forward.1
= control target key start
LH: loop header
LB: loop body
LE: loop exit
PB: predicated region body
PF: predicated region fallthrough
CT: control target
= control target key end

     0   :  { %v5643_v0 = vmov 0   ;;  %vm283_vm0 = vcmask 261120   ;;  %s5633_s2 = inlined_call_operand.vmem [shape: bf16[512,1], index: 2, kind: input, shape index: {}]   ;;  %s5634_s0 = inlined_call_operand.vmem [shape: f32[128,32], index: 0, kind: input, shape index: {}]   ;;  %s5635_s1 = inlined_call_operand.vmem [shape: bf16[512,32], index: 1, kind: input, shape index: {}]   ;;  %s5636_s8 = inlined_call_operand.<no memory space> [shape: bf16[1,1], index: 8, kind: input, shape index: {}]   ;;  %s5637_s4 = inlined_call_operand.vmem [shape: bf16[256,1], index: 4, kind: input, shape index: {}]   ;;  %s5638_s6 = inlined_call_operand.vmem [shape: bf16[64,1], index: 6, kind: input, shape index: {}]   ;;  %s5639_s7 = inlined_call_operand.vmem [shape: bf16[64,1], index: 7, kind: input, shape index: {}]   ;;  %s5640_s3 = inlined_call_operand.vmem [shape: bf16[256,512], index: 3, kind: input, shape index: {}]   ;;  %s5641_s5 = inlined_call_operand.vmem [shape: bf16[64,256], index: 5, kind: input, shape index: {}]   ;;  %s5642_s9 = inlined_call_operand.vmem [shape: f32[1,128], index: 9, kind: output, shape index: {}]  }
   0x1   :  { %3987 = vset.pattern.permute.xlu1 %v5643_v0  ;;  %3986 = vset.pattern.permute.xlu0 %v5643_v0  ;;  %v709_v1 = vld [vmem:[%s5633_s2 + $0x40] sm:$0xf]  ;;  %v36_v4 = vld [vmem:[%s5634_s0 + $0x8] sm:$0xff]  ;;  %v710_v6 = vld [vmem:[%s5633_s2 + $0x44] sm:$0xf] }
   0x2   :  { %v693_v2 = vld [vmem:[%s5633_s2] sm:$0xf]  ;;  %983 = vperm.xlu0 %3986, %v709_v1   ;;  %v37_v7 = vld [vmem:[%s5634_s0 + $0x10] sm:$0xff]  ;;  %v694_v8 = vld [vmem:[%s5633_s2 + $0x4] sm:$0xf] }
   0x3   :  { %v35_v3 = vld [vmem:[%s5634_s0] sm:$0xff]  ;;  %791 = vperm.xlu1 %3987, %v693_v2   ;;  %v38_v9 = vld [vmem:[%s5634_s0 + $0x18] sm:$0xff]  ;;  %v711_v12 = vld [vmem:[%s5633_s2 + $0x48] sm:$0xf] }
   0x4   :  { %v51_v5 = vpack.c.bf16 %v36_v4, %v35_v3  ;;  %v52_v11 = vpack.c.bf16 %v38_v9, %v37_v7  ;;  %v712_v13 = vld [vmem:[%s5633_s2 + $0x4c] sm:$0xf]  ;;  %v39_v14 = vld [vmem:[%s5634_s0 + $0x20] sm:$0xff]  ;;  %v695_v17 = vld [vmem:[%s5633_s2 + $0x8] sm:$0xf] }
   0x5   :  { %v40_v15 = vld [vmem:[%s5634_s0 + $0x28] sm:$0xff]  ;;  %v713_v20 = vld [vmem:[%s5633_s2 + $0x50] sm:$0xf]  ;;  %v714_v21 = vld [vmem:[%s5633_s2 + $0x54] sm:$0xf] }
   0x6   :  { %3975 = vmatprep.subr.msk.bf16.mxu0 %vm283_vm0, %v51_v5  ;;  %v381_v10 = vsel %vm283_vm0, %v51_v5, 0  ;;  %995 = vperm.xlu0 %3986, %v710_v6   ;;  %v384_v16 = vsel %vm283_vm0, %v52_v11, 0  ;;  %v53_v18 = vpack.c.bf16 %v40_v15, %v39_v14  ;;  %v696_v19 = vld [vmem:[%s5633_s2 + $0xc] sm:$0xf]  ;;  %v41_v22 = vld [vmem:[%s5634_s0 + $0x30] sm:$0xff]  ;;  %v42_v23 = vld [vmem:[%s5634_s0 + $0x38] sm:$0xff]  ;;  %v14_v14 = vstv %s5636_s8 }
   0x7   :  { %3880 = vmatpush3.bf16.xpose.msra.mxu0 %v381_v10  ;;  %803 = vperm.xlu1 %3987, %v694_v8   ;;  %v4023_v24 = vld [vmem:[%s5635_s1] sm:$0xff]   ;;  %v697_v26 = vld [vmem:[%s5633_s2 + $0x10] sm:$0xf]  ;;  %v54_v27 = vpack.c.bf16 %v42_v23, %v41_v22  ;;  %v698_v28 = vld [vmem:[%s5633_s2 + $0x14] sm:$0xf] }
   0x8   :  { %3976 = vmatprep.subr.msk.bf16.mxu0 %vm283_vm0, %v52_v11  ;;  %v387_v25 = vsel %vm283_vm0, %v53_v18, 0  ;;  %3895 = vmatprep.mubr.msk.bf16.mxu0 %vm283_vm0, %v4023_v24  ;;  %v715_v29 = vld [vmem:[%s5633_s2 + $0x58] sm:$0xf]  ;;  %v716_v30 = vld [vmem:[%s5633_s2 + $0x5c] sm:$0xf]  ;;  %v43_v31 = vld [vmem:[%s5634_s0 + $0x40] sm:$0xff] }
   0x9   :  { %v44_v32 = vld [vmem:[%s5634_s0 + $0x48] sm:$0xff]  ;;  %v390_v33 = vsel %vm283_vm0, %v54_v27, 0  ;;  %v699_v34 = vld [vmem:[%s5633_s2 + $0x18] sm:$0xf]  ;;  %v700_v36 = vld [vmem:[%s5633_s2 + $0x1c] sm:$0xf] }
   0xa   :  { %1007 = vperm.xlu0 %3986, %v711_v12   ;;  %v55_v35 = vpack.c.bf16 %v44_v32, %v43_v31  ;;  %v717_v37 = vld [vmem:[%s5633_s2 + $0x60] sm:$0xf]  ;;  %v718_v38 = vld [vmem:[%s5633_s2 + $0x64] sm:$0xf]  ;;  %v45_v39 = vld [vmem:[%s5634_s0 + $0x50] sm:$0xff] }
   0xb   :  { %1019 = vperm.xlu1 %3987, %v712_v13   ;;  %v46_v40 = vld [vmem:[%s5634_s0 + $0x58] sm:$0xff]  ;;  %v701_v41 = vld [vmem:[%s5633_s2 + $0x20] sm:$0xf]  ;;  %v702_v44 = vld [vmem:[%s5633_s2 + $0x24] sm:$0xf] }
   0xc   :  { %v393_v42 = vsel %vm283_vm0, %v55_v35, 0  ;;  %v56_v43 = vpack.c.bf16 %v46_v40, %v45_v39  ;;  %v719_v45 = vld [vmem:[%s5633_s2 + $0x68] sm:$0xf]  ;;  %v720_v46 = vld [vmem:[%s5633_s2 + $0x6c] sm:$0xf]  ;;  %v47_v47 = vld [vmem:[%s5634_s0 + $0x60] sm:$0xff] }
   0xd   :  { %v48_v48 = vld [vmem:[%s5634_s0 + $0x68] sm:$0xff]  ;;  %v721_v53 = vld [vmem:[%s5633_s2 + $0x70] sm:$0xf]  ;;  %v722_v54 = vld [vmem:[%s5633_s2 + $0x74] sm:$0xf] }
   0xe   :  { %815 = vperm.xlu0 %3986, %v695_v17   ;;  %v396_v49 = vsel %vm283_vm0, %v56_v43, 0  ;;  %v703_v50 = vld [vmem:[%s5633_s2 + $0x28] sm:$0xf]  ;;  %v57_v51 = vpack.c.bf16 %v48_v48, %v47_v47  ;;  %v704_v52 = vld [vmem:[%s5633_s2 + $0x2c] sm:$0xf]  ;;  %v49_v55 = vld [vmem:[%s5634_s0 + $0x70] sm:$0xff] }
   0xf   :  { %3882 = vmatpush3.bf16.xpose.msra.mxu0 %v384_v16  ;;  %827 = vperm.xlu1 %3987, %v696_v19   ;;  %v50_v56 = vld [vmem:[%s5634_s0 + $0x78] sm:$0xff]  ;;  %v705_v57 = vld [vmem:[%s5633_s2 + $0x30] sm:$0xf]  ;;  %v706_v60 = vld [vmem:[%s5633_s2 + $0x34] sm:$0xf] }
  0x10   :  { %3977 = vmatprep.subr.msk.bf16.mxu0 %vm283_vm0, %v53_v18  ;;  %v399_v58 = vsel %vm283_vm0, %v57_v51, 0  ;;  %v58_v59 = vpack.c.bf16 %v50_v56, %v49_v55  ;;  %v723_v61 = vld [vmem:[%s5633_s2 + $0x78] sm:$0xf]  ;;  %v724_v62 = vld [vmem:[%s5633_s2 + $0x7c] sm:$0xf]  ;;  %v4024_v5 = vld [vmem:[%s5635_s1 + $0x8] sm:$0xff]  }
  0x11   :  { %v707_v1 = vld [vmem:[%s5633_s2 + $0x38] sm:$0xf]  ;;  %v708_v2 = vld [vmem:[%s5633_s2 + $0x3c] sm:$0xf]  ;;  %v741_v3 = vld [vmem:[%s5633_s2 + $0xc0] sm:$0xf] }
  0x12   :  { %1031 = vperm.xlu0 %3986, %v713_v20   ;;  %v402_v63 = vsel %vm283_vm0, %v58_v59, 0  ;;  %v742_v4 = vld [vmem:[%s5633_s2 + $0xc4] sm:$0xf]  ;;  %v4025_v6 = vld [vmem:[%s5635_s1 + $0x10] sm:$0xff]   ;;  %v725_v7 = vld [vmem:[%s5633_s2 + $0x80] sm:$0xf] }
  0x13   :  { %1043 = vperm.xlu1 %3987, %v714_v21   ;;  %v726_v8 = vld [vmem:[%s5633_s2 + $0x84] sm:$0xf]  ;;  %v743_v9 = vld [vmem:[%s5633_s2 + $0xc8] sm:$0xf]  ;;  %v744_v10 = vld [vmem:[%s5633_s2 + $0xcc] sm:$0xf] }
  0x14   :  { %v4026_v11 = vld [vmem:[%s5635_s1 + $0x18] sm:$0xff]   ;;  %v4027_v12 = vld [vmem:[%s5635_s1 + $0x20] sm:$0xff]   ;;  %v727_v13 = vld [vmem:[%s5633_s2 + $0x88] sm:$0xf]  ;;  %15 = vst [vmem:[#allocation2] sm:$0x1] %v14_v14 }
  0x15   :  { %v728_v15 = vld [vmem:[%s5633_s2 + $0x8c] sm:$0xf]  ;;  %v745_v16 = vld [vmem:[%s5633_s2 + $0xd0] sm:$0xf]  ;;  %v746_v17 = vld [vmem:[%s5633_s2 + $0xd4] sm:$0xf] }
  0x16   :  { %839 = vperm.xlu0 %3986, %v697_v26   ;;  %v4028_v18 = vld [vmem:[%s5635_s1 + $0x28] sm:$0xff]   ;;  %v4029_v19 = vld [vmem:[%s5635_s1 + $0x30] sm:$0xff]   ;;  %v747_v22 = vld [vmem:[%s5633_s2 + $0xd8] sm:$0xf] }
  0x17   :  { %3884 = vmatpush3.bf16.xpose.msra.mxu0 %v387_v25  ;;  %851 = vperm.xlu1 %3987, %v698_v28   ;;  %v729_v20 = vld [vmem:[%s5633_s2 + $0x90] sm:$0xf]  ;;  %v730_v21 = vld [vmem:[%s5633_s2 + $0x94] sm:$0xf]  ;;  %v748_v23 = vld [vmem:[%s5633_s2 + $0xdc] sm:$0xf] }
  0x18   :  { %3978 = vmatprep.subr.msk.bf16.mxu0 %vm283_vm0, %v54_v27  ;;  %v4030_v24 = vld [vmem:[%s5635_s1 + $0x38] sm:$0xff]   ;;  %v4031_v25 = vld [vmem:[%s5635_s1 + $0x40] sm:$0xff]   ;;  %v4033_v31 = vld [vmem:[%s5635_s1 + $0x50] sm:$0xff]  }
  0x19   :  { %v731_v26 = vld [vmem:[%s5633_s2 + $0x98] sm:$0xf]  ;;  %v732_v27 = vld [vmem:[%s5633_s2 + $0x9c] sm:$0xf]  ;;  %v749_v28 = vld [vmem:[%s5633_s2 + $0xe0] sm:$0xf] }
  0x1a   :  { %1055 = vperm.xlu0 %3986, %v715_v29   ;;  %v750_v29 = vld [vmem:[%s5633_s2 + $0xe4] sm:$0xf]  ;;  %v733_v32 = vld [vmem:[%s5633_s2 + $0xa0] sm:$0xf]  ;;  %v736_v39 = vld [vmem:[%s5633_s2 + $0xac] sm:$0xf] }
  0x1b   :  { %1067 = vperm.xlu1 %3987, %v716_v30   ;;  %v4032_v30 = vld [vmem:[%s5635_s1 + $0x48] sm:$0xff]   ;;  %v753_v40 = vld [vmem:[%s5633_s2 + $0xf0] sm:$0xf]  ;;  %v756_v47 = vld [vmem:[%s5633_s2 + $0xfc] sm:$0xf] }
  0x1c   :  { %v4038_v48 = vld [vmem:[%s5635_s1 + $0x78] sm:$0xff]   ;;  %v4041_v55 = vld [vmem:[%s5635_s1 + $0x90] sm:$0xff]   ;;  %v2519_v56 = vld [vmem:[%s5637_s4] sm:$0xf] }
  0x1d   :  { %v2544_v14 = vld [vmem:[%s5637_s4 + $0x64] sm:$0xf] }
  0x1e   :  { %863 = vperm.xlu0 %3986, %v699_v34   ;;  %v751_v34 = vld [vmem:[%s5633_s2 + $0xe8] sm:$0xf] }
  0x1f   :  { %3886 = vmatpush3.bf16.xpose.msra.mxu0 %v390_v33  ;;  %875 = vperm.xlu1 %3987, %v700_v36   ;;  %v734_v33 = vld [vmem:[%s5633_s2 + $0xa4] sm:$0xf]  ;;  %v4034_v36 = vld [vmem:[%s5635_s1 + $0x58] sm:$0xff]  }
  0x20   :  { %3979 = vmatprep.subr.msk.bf16.mxu0 %vm283_vm0, %v55_v35  ;;  %v752_v35 = vld [vmem:[%s5633_s2 + $0xec] sm:$0xf] }
  0x22   :  { %1079 = vperm.xlu0 %3986, %v717_v37   ;;  %v4035_v37 = vld [vmem:[%s5635_s1 + $0x60] sm:$0xff]  }
  0x23   :  { %1091 = vperm.xlu1 %3987, %v718_v38   ;;  %v735_v38 = vld [vmem:[%s5633_s2 + $0xa8] sm:$0xf] }
  0x26   :  { %887 = vperm.xlu0 %3986, %v701_v41   ;;  %v754_v41 = vld [vmem:[%s5633_s2 + $0xf4] sm:$0xf] }
  0x27   :  { %3888 = vmatpush3.bf16.xpose.msra.mxu0 %v393_v42  ;;  %899 = vperm.xlu1 %3987, %v702_v44   ;;  %v4036_v42 = vld [vmem:[%s5635_s1 + $0x68] sm:$0xff]   ;;  %v737_v44 = vld [vmem:[%s5633_s2 + $0xb0] sm:$0xf] }
  0x28   :  { %3980 = vmatprep.subr.msk.bf16.mxu0 %vm283_vm0, %v56_v43  ;;  %v4037_v43 = vld [vmem:[%s5635_s1 + $0x70] sm:$0xff]  }
  0x2a   :  { %1103 = vperm.xlu0 %3986, %v719_v45   ;;  %v738_v45 = vld [vmem:[%s5633_s2 + $0xb4] sm:$0xf] }
  0x2b   :  { %1115 = vperm.xlu1 %3987, %v720_v46   ;;  %v755_v46 = vld [vmem:[%s5633_s2 + $0xf8] sm:$0xf] }
  0x2e   :  { %911 = vperm.xlu0 %3986, %v703_v50   ;;  %v739_v50 = vld [vmem:[%s5633_s2 + $0xb8] sm:$0xf] }
  0x2f   :  { %3890 = vmatpush3.bf16.xpose.msra.mxu0 %v396_v49  ;;  %923 = vperm.xlu1 %3987, %v704_v52   ;;  %v4039_v49 = vld [vmem:[%s5635_s1 + $0x80] sm:$0xff]  }
  0x30   :  { %3981 = vmatprep.subr.msk.bf16.mxu0 %vm283_vm0, %v57_v51  ;;  %v740_v51 = vld [vmem:[%s5633_s2 + $0xbc] sm:$0xf]  ;;  %v2535_v52 = vld [vmem:[%s5637_s4 + $0x40] sm:$0xf] }
  0x32   :  { %1127 = vperm.xlu0 %3986, %v721_v53   ;;  %v2536_v53 = vld [vmem:[%s5637_s4 + $0x44] sm:$0xf] }
  0x33   :  { %1139 = vperm.xlu1 %3987, %v722_v54   ;;  %v4040_v54 = vld [vmem:[%s5635_s1 + $0x88] sm:$0xff]  }
  0x36   :  { %935 = vperm.xlu0 %3986, %v705_v57   ;;  %v2520_v57 = vld [vmem:[%s5637_s4 + $0x4] sm:$0xf] }
  0x37   :  { %3892 = vmatpush3.bf16.xpose.msra.mxu0 %v399_v58  ;;  %947 = vperm.xlu1 %3987, %v706_v60   ;;  %v2537_v58 = vld [vmem:[%s5637_s4 + $0x48] sm:$0xf]  ;;  %v4042_v60 = vld [vmem:[%s5635_s1 + $0x98] sm:$0xff]  }
  0x38   :  { %3982 = vmatprep.subr.msk.bf16.mxu0 %vm283_vm0, %v58_v59  ;;  %v2538_v59 = vld [vmem:[%s5637_s4 + $0x4c] sm:$0xf] }
  0x3a   :  { %1151 = vperm.xlu0 %3986, %v723_v61   ;;  %v4043_v61 = vld [vmem:[%s5635_s1 + $0xa0] sm:$0xff]  }
  0x3b   :  { %1163 = vperm.xlu1 %3987, %v724_v62   ;;  %v2521_v62 = vld [vmem:[%s5637_s4 + $0x8] sm:$0xf] }
  0x3e   :  { %959 = vperm.xlu0 %3986, %v707_v1   ;;  %v2539_v1 = vld [vmem:[%s5637_s4 + $0x50] sm:$0xf] }
  0x3f   :  { %3894 = vmatpush3.bf16.xpose.msra.mxu0 %v402_v63  ;;  %971 = vperm.xlu1 %3987, %v708_v2   ;;  %v2522_v63 = vld [vmem:[%s5637_s4 + $0xc] sm:$0xf]  ;;  %v2540_v2 = vld [vmem:[%s5637_s4 + $0x54] sm:$0xf] }
  0x42   :  { %1367 = vperm.xlu0 %3986, %v741_v3   ;;  %v4044_v3 = vld [vmem:[%s5635_s1 + $0xa8] sm:$0xff]  }
  0x43   :  { %1379 = vperm.xlu1 %3987, %v742_v4   ;;  %v4045_v4 = vld [vmem:[%s5635_s1 + $0xb0] sm:$0xff]  }
  0x46   :  { %3896 = vmatmul.mubr.msk.bf16.vlgmr.msra.gmra.mrb[0].mxu0 %vm283_vm0, %v4024_v5  ;;  %1175 = vperm.xlu0 %3986, %v725_v7   ;;  %v2523_v5 = vld [vmem:[%s5637_s4 + $0x10] sm:$0xf]  ;;  %v2541_v7 = vld [vmem:[%s5637_s4 + $0x58] sm:$0xf] }
  0x47   :  { %3899 = vmatprep.mubr.msk.bf16.mxu0 %vm283_vm0, %v4025_v6  ;;  %1187 = vperm.xlu1 %3987, %v726_v8   ;;  %v2524_v6 = vld [vmem:[%s5637_s4 + $0x14] sm:$0xf]  ;;  %v2542_v8 = vld [vmem:[%s5637_s4 + $0x5c] sm:$0xf] }
  0x4a   :  { %1391 = vperm.xlu0 %3986, %v743_v9   ;;  %v4046_v9 = vld [vmem:[%s5635_s1 + $0xb8] sm:$0xff]  }
  0x4b   :  { %1403 = vperm.xlu1 %3987, %v744_v10   ;;  %v4047_v10 = vld [vmem:[%s5635_s1 + $0xc0] sm:$0xff]  }
  0x4e   :  { %3900 = vmatmul.mubr.msk.bf16.gmra.mrb[4].mxu0 %vm283_vm0, %v4026_v11  ;;  %1199 = vperm.xlu0 %3986, %v727_v13   ;;  %v2525_v11 = vld [vmem:[%s5637_s4 + $0x18] sm:$0xf]  ;;  %v2543_v13 = vld [vmem:[%s5637_s4 + $0x60] sm:$0xf] }
  0x4f   :  { %3903 = vmatprep.mubr.msk.bf16.mxu0 %vm283_vm0, %v4027_v12  ;;  %1211 = vperm.xlu1 %3987, %v728_v15   ;;  %v2526_v12 = vld [vmem:[%s5637_s4 + $0x1c] sm:$0xf]  ;;  %v4048_v15 = vld [vmem:[%s5635_s1 + $0xc8] sm:$0xff]  }
  0x52   :  { %1415 = vperm.xlu0 %3986, %v745_v16   ;;  %v4049_v16 = vld [vmem:[%s5635_s1 + $0xd0] sm:$0xff]  }
  0x53   :  { %1427 = vperm.xlu1 %3987, %v746_v17   ;;  %v2527_v17 = vld [vmem:[%s5637_s4 + $0x20] sm:$0xf] }
  0x56   :  { %3904 = vmatmul.mubr.msk.bf16.gmra.mrb[8].mxu0 %vm283_vm0, %v4028_v18  ;;  %1223 = vperm.xlu0 %3986, %v729_v20   ;;  %v2528_v18 = vld [vmem:[%s5637_s4 + $0x24] sm:$0xf]  ;;  %v2546_v20 = vld [vmem:[%s5637_s4 + $0x6c] sm:$0xf] }
  0x57   :  { %3907 = vmatprep.mubr.msk.bf16.mxu0 %vm283_vm0, %v4029_v19  ;;  %1235 = vperm.xlu1 %3987, %v730_v21   ;;  %v2545_v19 = vld [vmem:[%s5637_s4 + $0x68] sm:$0xf]  ;;  %v4050_v21 = vld [vmem:[%s5635_s1 + $0xd8] sm:$0xff]  }
  0x5a   :  { %1439 = vperm.xlu0 %3986, %v747_v22   ;;  %v4051_v22 = vld [vmem:[%s5635_s1 + $0xe0] sm:$0xff]  }
  0x5b   :  { %1451 = vperm.xlu1 %3987, %v748_v23   ;;  %v2529_v23 = vld [vmem:[%s5637_s4 + $0x28] sm:$0xf] }
  0x5e   :  { %3908 = vmatmul.mubr.msk.bf16.gmra.mrb[12].mxu0 %vm283_vm0, %v4030_v24  ;;  %1247 = vperm.xlu0 %3986, %v731_v26   ;;  %v2530_v24 = vld [vmem:[%s5637_s4 + $0x2c] sm:$0xf]  ;;  %v2548_v26 = vld [vmem:[%s5637_s4 + $0x74] sm:$0xf] }
  0x5f   :  { %3911 = vmatprep.mubr.msk.bf16.mxu0 %vm283_vm0, %v4031_v25  ;;  %1259 = vperm.xlu1 %3987, %v732_v27   ;;  %v2547_v25 = vld [vmem:[%s5637_s4 + $0x70] sm:$0xf]  ;;  %v4052_v27 = vld [vmem:[%s5635_s1 + $0xe8] sm:$0xff]  }
  0x62   :  { %1463 = vperm.xlu0 %3986, %v749_v28   ;;  %v4053_v28 = vld [vmem:[%s5635_s1 + $0xf0] sm:$0xff]  }
  0x63   :  { %1475 = vperm.xlu1 %3987, %v750_v29   ;;  %v2531_v29 = vld [vmem:[%s5637_s4 + $0x30] sm:$0xf] }
  0x66   :  { %3912 = vmatmul.mubr.msk.bf16.gmra.mrb[16].mxu0 %vm283_vm0, %v4032_v30  ;;  %1271 = vperm.xlu0 %3986, %v733_v32   ;;  %v2532_v30 = vld [vmem:[%s5637_s4 + $0x34] sm:$0xf]  ;;  %v3538_v32 = vld [vmem:[%s5638_s6] sm:$0xff]  }
  0x67   :  { %3915 = vmatprep.mubr.msk.bf16.mxu0 %vm283_vm0, %v4033_v31  ;;  %1283 = vperm.xlu1 %3987, %v734_v33   ;;  %v2549_v31 = vld [vmem:[%s5637_s4 + $0x78] sm:$0xf]  ;;  %v2550_v33 = vld [vmem:[%s5637_s4 + $0x7c] sm:$0xf] }
  0x6a   :  { %1487 = vperm.xlu0 %3986, %v751_v34   ;;  %v3569_v34 = vld [vmem:[%s5638_s6 + $0x8] sm:$0xff]  }
  0x6b   :  { %1499 = vperm.xlu1 %3987, %v752_v35   ;;  %v4054_v35 = vld [vmem:[%s5635_s1 + $0xf8] sm:$0xff]  }
  0x6e   :  { %3916 = vmatmul.mubr.msk.bf16.gmra.mrb[20].mxu0 %vm283_vm0, %v4034_v36  ;;  %1295 = vperm.xlu0 %3986, %v735_v38   ;;  %v3539_v36 = vunpack.c.l.bf16 %v3538_v32  ;;  %v2533_v38 = vld [vmem:[%s5637_s4 + $0x38] sm:$0xf] }
  0x6f   :  { %3919 = vmatprep.mubr.msk.bf16.mxu0 %vm283_vm0, %v4035_v37  ;;  %1307 = vperm.xlu1 %3987, %v736_v39   ;;  %v3540_v37 = vunpack.c.h.bf16 %v3538_v32  ;;  %v3543_v39 = vunpack.c.l.bf16 %v3569_v34 }
  0x72   :  { %1511 = vperm.xlu0 %3986, %v753_v40   ;;  %v3544_v40 = vunpack.c.h.bf16 %v3569_v34 }
  0x73   :  { %1523 = vperm.xlu1 %3987, %v754_v41   ;;  %v3554_v41 = vld [vmem:[%s5639_s7] sm:$0xff]  }
  0x76   :  { %3920 = vmatmul.mubr.msk.bf16.gmra.mrb[24].mxu0 %vm283_vm0, %v4036_v42  ;;  %1319 = vperm.xlu0 %3986, %v737_v44   ;;  %v2534_v42 = vld [vmem:[%s5637_s4 + $0x3c] sm:$0xf]  ;;  %v3572_v44 = vld [vmem:[%s5639_s7 + $0x8] sm:$0xff]  }
  0x77   :  { %3923 = vmatprep.mubr.msk.bf16.mxu0 %vm283_vm0, %v4037_v43  ;;  %1331 = vperm.xlu1 %3987, %v738_v45   ;;  %v3570_v43 = vld [vmem:[%s5638_s6 + $0x10] sm:$0xff]   ;;  %v3988_v45 = vpack.i.bf16 %v3540_v37, %v3539_v36 }
  0x7a   :  { %1535 = vperm.xlu0 %3986, %v755_v46   ;;  %v3555_v46 = vunpack.c.l.bf16 %v3554_v41 }
  0x7b   :  { %1547 = vperm.xlu1 %3987, %v756_v47   ;;  %v3556_v47 = vunpack.c.h.bf16 %v3554_v41 }
  0x7e   :  { %3924 = vmatmul.mubr.msk.bf16.gmra.mrb[28].mxu0 %vm283_vm0, %v4038_v48  ;;  %1343 = vperm.xlu0 %3986, %v739_v50   ;;  %v3993_v48 = vpack.i.bf16 %v3544_v40, %v3543_v39  ;;  %v3559_v50 = vunpack.c.l.bf16 %v3572_v44 }
  0x7f   :  { %3927 = vmatprep.mubr.msk.bf16.mxu0 %vm283_vm0, %v4039_v49  ;;  %1355 = vperm.xlu1 %3987, %v740_v51   ;;  %v3547_v49 = vunpack.c.l.bf16 %v3570_v43 }
  0x81   :  { %v4724_v51 = vpop.permute.xlu0 %983 }
  0x82   :  { %2761 = vperm.xlu0 %3986, %v2535_v52   ;;  %v3571_v52 = vld [vmem:[%s5638_s6 + $0x18] sm:$0xff]  }
  0x83   :  { %2773 = vperm.xlu1 %3987, %v2536_v53   ;;  %v3573_v53 = vld [vmem:[%s5639_s7 + $0x10] sm:$0xff]  }
  0x86   :  { %3928 = vmatmul.mubr.msk.bf16.gmra.mrb[32].mxu0 %vm283_vm0, %v4040_v54  ;;  %2569 = vperm.xlu0 %3986, %v2519_v56   ;;  %v4732_v54 = vpop.permute.xlu1 %791  ;;  %v3548_v56 = vunpack.c.h.bf16 %v3570_v43 }
  0x87   :  { %3931 = vmatprep.mubr.msk.bf16.mxu0 %vm283_vm0, %v4041_v55  ;;  %2581 = vperm.xlu1 %3987, %v2520_v57   ;;  %v3998_v55 = vpack.i.bf16 %v3556_v47, %v3555_v46  ;;  %v3560_v57 = vunpack.c.h.bf16 %v3572_v44 }
  0x8a   :  { %2785 = vperm.xlu0 %3986, %v2537_v58   ;;  %v4003_v58 = vpack.i.bf16 %v3559_v50, %v3547_v49  ;;  %v797_v50 = vlaneseq }
  0x8b   :  { %2797 = vperm.xlu1 %3987, %v2538_v59   ;;  %v3551_v59 = vunpack.c.l.bf16 %v3571_v52 }
  0x8e   :  { %3932 = vmatmul.mubr.msk.bf16.gmra.mrb[36].mxu0 %vm283_vm0, %v4042_v60  ;;  %2593 = vperm.xlu0 %3986, %v2521_v62   ;;  %v3563_v60 = vunpack.c.l.bf16 %v3573_v53  ;;  %v4008_v62 = vpack.i.bf16 %v3560_v57, %v3548_v56 }
  0x8f   :  { %3935 = vmatprep.mubr.msk.bf16.mxu0 %vm283_vm0, %v4043_v61  ;;  %2605 = vperm.xlu1 %3987, %v2522_v63   ;;  %v4734_v61 = vpop.permute.xlu0 %995  ;;  %v3552_v63 = vunpack.c.h.bf16 %v3571_v52 }
  0x92   :  { %2809 = vperm.xlu0 %3986, %v2539_v1   ;;  %v3564_v1 = vunpack.c.h.bf16 %v3573_v53 }
  0x93   :  { %2821 = vperm.xlu1 %3987, %v2540_v2   ;;  %v4736_v2 = vpop.permute.xlu1 %803 }
  0x96   :  { %3936 = vmatmul.mubr.msk.bf16.gmra.mrb[40].mxu0 %vm283_vm0, %v4044_v3  ;;  %2617 = vperm.xlu0 %3986, %v2523_v5   ;;  %v4013_v3 = vpack.i.bf16 %v3563_v60, %v3551_v59  ;;  %v4018_v5 = vpack.i.bf16 %v3564_v1, %v3552_v63 }
  0x97   :  { %3939 = vmatprep.mubr.msk.bf16.mxu0 %vm283_vm0, %v4045_v4  ;;  %2629 = vperm.xlu1 %3987, %v2524_v6   ;;  %v3574_v4 = vld [vmem:[%s5639_s7 + $0x18] sm:$0xff]  }
  0x98   :  { %v3567_v6 = vunpack.c.l.bf16 %v3574_v4 }
  0x9a   :  { %2833 = vperm.xlu0 %3986, %v2541_v7   ;;  %v4741_v7 = vpop.permute.xlu0 %1007 }
  0x9b   :  { %2845 = vperm.xlu1 %3987, %v2542_v8   ;;  %v3333_v8 = vld [vmem:[#allocation2] sm:$0x1] }
  0x9e   :  { %3940 = vmatmul.mubr.msk.bf16.gmra.mrb[44].mxu0 %vm283_vm0, %v4046_v9  ;;  %2641 = vperm.xlu0 %3986, %v2525_v11   ;;  %v4743_v9 = vpop.permute.xlu1 %1019  ;;  %v3334_v11 = vunpack.c.l.bf16 %v3333_v8 }
  0x9f   :  { %3943 = vmatprep.mubr.msk.bf16.mxu0 %vm283_vm0, %v4047_v10  ;;  %2653 = vperm.xlu1 %3987, %v2526_v12   ;;  %v3568_v10 = vunpack.c.h.bf16 %v3574_v4  ;;  %v4745_v12 = vpop.permute.xlu0 %815 }
  0xa2   :  { %2857 = vperm.xlu0 %3986, %v2543_v13   ;;  %v4747_v13 = vpop.permute.xlu1 %827 }
  0xa3   :  { %2869 = vperm.xlu1 %3987, %v2544_v14   ;;  %v4057_v14 = vld [vmem:[%s5640_s3 + $0x84] ss:$16 sps:$4 sm:$0xff]  }
  0xa4   :  { %2261 = vmatprep.mubr.bf16.mxu1 %v4057_v14 }
  0xa6   :  { %3944 = vmatmul.mubr.msk.bf16.gmra.mrb[48].mxu0 %vm283_vm0, %v4048_v15  ;;  %2665 = vperm.xlu0 %3986, %v2527_v17   ;;  %v4752_v15 = vpop.permute.xlu0 %1031 }
  0xa7   :  { %3947 = vmatprep.mubr.msk.bf16.mxu0 %vm283_vm0, %v4049_v16  ;;  %2677 = vperm.xlu1 %3987, %v2528_v18   ;;  %v4754_v16 = vpop.permute.xlu1 %1043 }
  0xaa   :  { %2881 = vperm.xlu0 %3986, %v2545_v19   ;;  %v4756_v17 = vpop.permute.xlu0 %839 }
  0xab   :  { %2893 = vperm.xlu1 %3987, %v2546_v20   ;;  %v4758_v18 = vpop.permute.xlu1 %851 }
  0xae   :  { %3948 = vmatmul.mubr.msk.bf16.gmra.mrb[52].mxu0 %vm283_vm0, %v4050_v21  ;;  %2689 = vperm.xlu0 %3986, %v2529_v23   ;;  %v4760_v19 = vpop.permute.xlu0 %1055 }
  0xaf   :  { %3951 = vmatprep.mubr.msk.bf16.mxu0 %vm283_vm0, %v4051_v22  ;;  %2701 = vperm.xlu1 %3987, %v2530_v24   ;;  %v4762_v20 = vpop.permute.xlu1 %1067 }
  0xb2   :  { %2905 = vperm.xlu0 %3986, %v2547_v25   ;;  %v4764_v21 = vpop.permute.xlu0 %863 }
  0xb3   :  { %2917 = vperm.xlu1 %3987, %v2548_v26   ;;  %v4766_v22 = vpop.permute.xlu1 %875 }
  0xb6   :  { %3952 = vmatmul.mubr.msk.bf16.gmra.mrb[56].mxu0 %vm283_vm0, %v4052_v27  ;;  %2713 = vperm.xlu0 %3986, %v2531_v29   ;;  %v4768_v23 = vpop.permute.xlu0 %1079 }
  0xb7   :  { %3955 = vmatprep.mubr.msk.bf16.mxu0 %vm283_vm0, %v4053_v28  ;;  %2725 = vperm.xlu1 %3987, %v2532_v30   ;;  %v4770_v24 = vpop.permute.xlu1 %1091 }
  0xba   :  { %2929 = vperm.xlu0 %3986, %v2549_v31   ;;  %v4772_v25 = vpop.permute.xlu0 %887 }
  0xbb   :  { %2941 = vperm.xlu1 %3987, %v2550_v33   ;;  %v4774_v26 = vpop.permute.xlu1 %899 }
  0xbe   :  { %3956 = vmatmul.mubr.msk.bf16.gmra.mrb[60].mxu0 %vm283_vm0, %v4054_v35  ;;  %2737 = vperm.xlu0 %3986, %v2533_v38   ;;  %v4776_v27 = vpop.permute.xlu0 %1103 }
  0xbf   :  { %2749 = vperm.xlu1 %3987, %v2534_v42   ;;  %v4778_v28 = vpop.permute.xlu1 %1115 }
  0xc2   :  { %3989 = vperm.xlu0 %3986, %v3988_v45   ;;  %v4782_v30 = vpop.permute.xlu0 %911 }
  0xc3   :  { %3994 = vperm.xlu1 %3987, %v3993_v48   ;;  %v4784_v32 = vpop.permute.xlu1 %923  ;;  %v4172_v48 = vmov 839922192  }
  0xc4   :  { %v795_v49 = vunpack.c.l.s4 %v4172_v48 }
  0xc6   :  { %3999 = vperm.xlu0 %3986, %v3998_v55   ;;  %v4790_v37 = vpop.permute.xlu0 %1127  ;;  %v796_v60 = vunpack.c.0.s8 %v795_v49 }
  0xc7   :  { %4004 = vperm.xlu1 %3987, %v4003_v58   ;;  %v4792_v38 = vpop.permute.xlu1 %1139 }
  0xca   :  { %4009 = vperm.xlu0 %3986, %v4008_v62   ;;  %v4806_v45 = vpop.permute.xlu0 %935  ;;  %v4826_v62 = vshrl.u32 %v797_v50, 7 }
  0xcb   :  { %4014 = vperm.xlu1 %3987, %v4013_v3   ;;  %v4808_v46 = vpop.permute.xlu1 %947 }
  0xcc   :  { %5648 = vst [vmem:[#allocation3_spill] sm:$0xff] %v4826_v62  ;;  %v4831_v1 = vsub.s32 %v796_v60, %v4826_v62 }
  0xce   :  { %4019 = vperm.xlu0 %3986, %v4018_v5   ;;  %v4816_v55 = vpop.permute.xlu0 %1151  ;;  %v800_v14 = vrot.slane %v4732_v54, %v4831_v1  ;;  %v992_v48 = vrot.slane %v4724_v51, %v4831_v1  ;;  %v1004_v49 = vrot.slane %v4734_v61, %v4831_v1  ;;  %v1016_v50 = vrot.slane %v4741_v7, %v4831_v1  ;;  %v4093_v61 = vld [vmem:[%s5640_s3 + $0x4] ss:$16 sps:$4 sm:$0xff]  }
  0xcf   :  { %3304 = vperm.xlu1 %3987, %v3567_v6   ;;  %v4822_v58 = vpop.permute.xlu1 %1163  ;;  %v1028_v60 = vrot.slane %v4743_v9, %v4831_v1  ;;  %v836_v56 = vrot.slane %v4747_v13, %v4831_v1  ;;  %2229 = vmatprep.mubr.bf16.mxu0 %v4093_v61  ;;  %v860_v13 = vrot.slane %v4758_v18, %v4831_v1 }
  0xd0   :  { %v3425_v44 = vcombine.low %v992_v48, %v1004_v49  ;;  %v908_v61 = vrot.slane %v4774_v26, %v4831_v1 }
  0xd1   :  { %v3426_v9 = vcombine.low %v1016_v50, %v1028_v60 }
  0xd2   :  { %3309 = vperm.xlu0 %3986, %v3568_v10   ;;  %v4833_v3 = vpop.permute.xlu0 %959 }
  0xd3   :  { %3337 = vperm.xlu1 %3987, %v3334_v11   ;;  %v4837_v5 = vpop.permute.xlu1 %971 }
  0xd7   :  { %v4861_v8 = vpop.permute.xlu1 %1379 }
  0xd8   :  { %5650 = vst [vmem:[#allocation5_spill] sm:$0xff] %v4861_v8 }
  0xdb   :  { %v4876_v62 = vpop.permute.xlu1 %1187 }
 0x119   :  { %v4780_v29 = vpop.f32.mrb[0].mxu0 }
 0x11a   :  { %v438_v31 = vpop.f32.mrb[1].mxu0 }
 0x11b   :  { %v4786_v33 = vpop.f32.mrb[2].mxu0 }
 0x11c   :  { %v441_v35 = vpop.f32.mrb[3].mxu0  ;;  %v5652_v18 = vpack.c.bf16 %v4786_v33, %v4780_v29 }
 0x11d   :  { %v757_v36 = vpack.c.bf16 %v441_v35, %v438_v31  ;;  %v812_v31 = vrot.slane %v4736_v2, %v4831_v1  ;;  %v4851_v35 = vpop.permute.xlu0 %1367  ;;  %v824_v2 = vrot.slane %v4745_v12, %v4831_v1  ;;  %v848_v12 = vrot.slane %v4756_v17, %v4831_v1 }
 0x11e   :  { %5649 = vst [vmem:[#allocation4_spill] sm:$0xff] %v4851_v35 }
 0x11f   :  { %v3417_v11 = vcombine.low %v800_v14, %v812_v31  ;;  %v3418_v0 = vcombine.low %v824_v2, %v836_v56  ;;  %v1064_v56 = vrot.slane %v4760_v19, %v4831_v1  ;;  %v872_v19 = vrot.slane %v4764_v21, %v4831_v1 }
 0x121   :  { %v4794_v39 = vpop.f32.mrb[4].mxu0  ;;  %v4870_v14 = vpop.permute.xlu0 %1175  ;;  %v1749_v31 = vadd.bf16 %v3417_v11, %v757_v36  ;;  %v1076_v36 = vrot.slane %v4762_v20, %v4831_v1  ;;  %v5651_v11 = vmov 0   ;;  %v1750_v49 = vadd.bf16 %v3418_v0, %v5652_v18 }
 0x122   :  { %v4796_v40 = vpop.f32.mrb[5].mxu0  ;;  %v884_v20 = vrot.slane %v4766_v22, %v4831_v1  ;;  %v896_v22 = vrot.slane %v4772_v25, %v4831_v1  ;;  %v1124_v25 = vrot.slane %v4778_v28, %v4831_v1  ;;  %v920_v28 = vrot.slane %v4782_v30, %v4831_v1 }
 0x123   :  { %v4798_v41 = vpop.f32.mrb[6].mxu0  ;;  %v3428_v33 = vcombine.low %v1064_v56, %v1076_v36  ;;  %v932_v18 = vrot.slane %v4784_v32, %v4831_v1  ;;  %v944_v30 = vrot.slane %v4806_v45, %v4831_v1  ;;  %v956_v32 = vrot.slane %v4808_v46, %v4831_v1 }
 0x124   :  { %v4802_v43 = vpop.f32.mrb[7].mxu0  ;;  %v1172_v45 = vrot.slane %v4822_v58, %v4831_v1  ;;  %v968_v58 = vrot.slane %v4833_v3, %v4831_v1 }
 0x125   :  { %v5653_v21 = vpack.c.bf16 %v4802_v43, %v4796_v40  ;;  %v1112_v40 = vrot.slane %v4776_v27, %v4831_v1 }
 0x129   :  { %v4810_v47 = vpop.f32.mrb[8].mxu0 }
 0x12a   :  { %v4812_v52 = vpop.f32.mrb[9].mxu0 }
 0x12b   :  { %v4814_v53 = vpop.f32.mrb[10].mxu0 }
 0x12c   :  { %v4820_v57 = vpop.f32.mrb[11].mxu0 }
 0x131   :  { %v4828_v63 = vpop.f32.mrb[12].mxu0 }
 0x132   :  { %v4835_v4 = vpop.f32.mrb[13].mxu0 }
 0x133   :  { %v4839_v6 = vpop.f32.mrb[14].mxu0 }
 0x134   :  { %v4843_v10 = vpop.f32.mrb[15].mxu0 }
 0x139   :  { %v3913_v54 = vpop.f32.mrb[16].mxu0 }
 0x13a   :  { %v502_v51 = vpop.f32.mrb[17].mxu0 }
 0x13b   :  { %v3914_v59 = vpop.f32.mrb[18].mxu0 }
 0x13c   :  { %v766_v7 = vpack.c.bf16 %v3914_v59, %v3913_v54  ;;  %v505_v42 = vpop.f32.mrb[19].mxu0  ;;  %v1040_v59 = vrot.slane %v4752_v15, %v4831_v1  ;;  %v3419_v15 = vcombine.low %v848_v12, %v860_v13  ;;  %v4898_v54 = vpop.permute.xlu1 %1403  ;;  %v1088_v12 = vrot.slane %v4768_v23, %v4831_v1 }
 0x13d   :  { %v765_v34 = vpack.c.bf16 %v505_v42, %v502_v51  ;;  %v1052_v42 = vrot.slane %v4754_v16, %v4831_v1  ;;  %v1100_v13 = vrot.slane %v4770_v24, %v4831_v1 }
 0x13e   :  { %v1758_v8 = vadd.bf16 %v3426_v9, %v766_v7  ;;  %v1751_v51 = vadd.bf16 %v3419_v15, %v5653_v21 }
 0x13f   :  { %v1757_v35 = vadd.bf16 %v3425_v44, %v765_v34  ;;  %v1781_v34 = vmax.bf16 %v5651_v11, %v1749_v31  ;;  %v3427_v0 = vcombine.low %v1040_v59, %v1052_v42  ;;  %v3420_v31 = vcombine.low %v872_v19, %v884_v20 }
 0x140   :  { %v1790_v16 = vmax.bf16 %v5651_v11, %v1758_v8  ;;  %v1782_v8 = vmax.bf16 %v5651_v11, %v1750_v49  ;;  %v5654_v42 = vpack.c.bf16 %v4798_v41, %v4794_v39  ;;  %v1783_v56 = vmax.bf16 %v5651_v11, %v1751_v51  ;;  %v4923_v24 = vpop.permute.xlu1 %1211 }
 0x141   :  { %v3917_v17 = vpop.f32.mrb[20].mxu0  ;;  %v1789_v48 = vmax.bf16 %v5651_v11, %v1757_v35  ;;  %v4896_v35 = vpop.permute.xlu0 %1391  ;;  %v3429_v41 = vcombine.low %v1088_v12, %v1100_v13 }
 0x142   :  { %v518_v44 = vpop.f32.mrb[21].mxu0  ;;  %v1752_v23 = vadd.bf16 %v3420_v31, %v5654_v42 }
 0x143   :  { %v3918_v50 = vpop.f32.mrb[22].mxu0  ;;  %3615 = vmatprep.subr.bf16.mxu0 %v1789_v48  ;;  %3959 = vmatprep.subr.bf16.mxu1 %v1789_v48 }
 0x144   :  { %v768_v60 = vpack.c.bf16 %v3918_v50, %v3917_v17  ;;  %v521_v29 = vpop.f32.mrb[23].mxu0  ;;  %3616 = vmatpush3.bf16.msra.mxu0 %v1781_v34  ;;  %3967 = vmatpush3.bf16.msra.mxu1 %v1781_v34  ;;  %v3421_v17 = vcombine.low %v896_v22, %v908_v61  ;;  %v3430_v34 = vcombine.low %v1112_v40, %v1124_v25  ;;  %v4948_v46 = vpop.permute.xlu1 %1427 }
 0x145   :  { %v767_v2 = vpack.c.bf16 %v521_v29, %v518_v44  ;;  %3617 = vmatprep.subr.bf16.mxu0 %v1790_v16  ;;  %3960 = vmatprep.subr.bf16.mxu1 %v1790_v16  ;;  %v4917_v59 = vpop.permute.xlu0 %1199  ;;  %v1784_v15 = vmax.bf16 %v5651_v11, %v1752_v23  ;;  %v5655_v50 = vpack.c.bf16 %v4820_v57, %v4812_v52 }
 0x146   :  { %v1760_v7 = vadd.bf16 %v3428_v33, %v768_v60  ;;  %v3422_v60 = vcombine.low %v920_v28, %v932_v18  ;;  %v1136_v29 = vrot.slane %v4790_v37, %v4831_v1  ;;  %v1148_v52 = vrot.slane %v4792_v38, %v4831_v1 }
 0x147   :  { %v1759_v9 = vadd.bf16 %v3427_v0, %v767_v2  ;;  %v1753_v16 = vadd.bf16 %v3421_v17, %v5655_v50  ;;  %v1160_v57 = vrot.slane %v4816_v55, %v4831_v1  ;;  %v5656_v37 = vpack.c.bf16 %v4814_v53, %v4810_v47 }
 0x148   :  { %3618 = vmatpush3.bf16.msra.mxu0 %v1782_v8  ;;  %3968 = vmatpush3.bf16.msra.mxu1 %v1782_v8  ;;  %v1792_v27 = vmax.bf16 %v5651_v11, %v1760_v7  ;;  %v3423_v22 = vcombine.low %v944_v30, %v956_v32  ;;  %v980_v61 = vrot.slane %v4837_v5, %v4831_v1  ;;  %v4966_v25 = vpop.permute.xlu1 %1235 }
 0x149   :  { %v3921_v43 = vpop.f32.mrb[24].mxu0  ;;  %v1791_v26 = vmax.bf16 %v5651_v11, %v1759_v9  ;;  %v4940_v0 = vpop.permute.xlu0 %1415  ;;  %v1754_v8 = vadd.bf16 %v3422_v60, %v5656_v37  ;;  %v1785_v21 = vmax.bf16 %v5651_v11, %v1753_v16  ;;  %v3431_v47 = vcombine.low %v1136_v29, %v1148_v52  ;;  %v4060_v29 = vld [vmem:[%s5640_s3 + $0xa0] ss:$16 sps:$4 sm:$0xff]  }
 0x14a   :  { %v534_v36 = vpop.f32.mrb[25].mxu0  ;;  %v3432_v53 = vcombine.low %v1160_v57, %v1172_v45  ;;  %v5657_v40 = vpack.c.bf16 %v4843_v10, %v4835_v4  ;;  %v4101_v52 = vld [vmem:[%s5640_s3 + $0x20] ss:$16 sps:$4 sm:$0xff]   ;;  %v4061_v45 = vld [vmem:[%s5640_s3 + $0xc4] ss:$16 sps:$4 sm:$0xff]  }
 0x14b   :  { %v3922_v48 = vpop.f32.mrb[26].mxu0  ;;  %3619 = vmatprep.subr.bf16.mxu0 %v1791_v26  ;;  %3961 = vmatprep.subr.bf16.mxu1 %v1791_v26  ;;  %v1786_v13 = vmax.bf16 %v5651_v11, %v1754_v8  ;;  %v3424_v26 = vcombine.low %v968_v58, %v980_v61  ;;  %v4063_v61 = vld [vmem:[%s5640_s3 + $0xc0] ss:$16 sps:$4 sm:$0xff]  }
 0x14c   :  { %v770_v49 = vpack.c.bf16 %v3922_v48, %v3921_v43  ;;  %v537_v39 = vpop.f32.mrb[27].mxu0  ;;  %3620 = vmatpush3.bf16.msra.mxu0 %v1783_v56  ;;  %3969 = vmatpush3.bf16.msra.mxu1 %v1783_v56  ;;  %v1755_v3 = vadd.bf16 %v3423_v22, %v5657_v40  ;;  %v5658_v56 = vpack.c.bf16 %v4839_v6, %v4828_v63  ;;  %v4986_v63 = vpop.permute.xlu1 %1451 }
 0x14d   :  { %v769_v44 = vpack.c.bf16 %v537_v39, %v534_v36  ;;  %3621 = vmatprep.subr.bf16.mxu0 %v1792_v27  ;;  %3962 = vmatprep.subr.bf16.mxu1 %v1792_v27  ;;  %v4960_v12 = vpop.permute.xlu0 %1223  ;;  %v4055_v39 = vld [vmem:[%s5640_s3 + $0x80] ss:$16 sps:$4 sm:$0xff]  }
 0x14e   :  { %v1762_v19 = vadd.bf16 %v3430_v34, %v770_v49  ;;  %v1756_v36 = vadd.bf16 %v3424_v26, %v5658_v56  ;;  %v1787_v17 = vmax.bf16 %v5651_v11, %v1755_v3  ;;  %v4058_v34 = vld [vmem:[%s5640_s3 + $0xa4] ss:$16 sps:$4 sm:$0xff]   ;;  %v4113_v56 = vld [vmem:[%s5640_s3 + $0x60] ss:$16 sps:$4 sm:$0xff]  }
 0x14f   :  { %v1761_v20 = vadd.bf16 %v3429_v41, %v769_v44  ;;  %v4091_v41 = vld [vmem:[%s5640_s3] ss:$16 sps:$4 sm:$0xff]   ;;  %v4097_v44 = vld [vmem:[%s5640_s3 + $0x24] ss:$16 sps:$4 sm:$0xff]  }
 0x150   :  { %3622 = vmatpush3.bf16.msra.mxu0 %v1784_v15  ;;  %3970 = vmatpush3.bf16.msra.mxu1 %v1784_v15  ;;  %v1794_v55 = vmax.bf16 %v5651_v11, %v1762_v19  ;;  %v1788_v49 = vmax.bf16 %v5651_v11, %v1756_v36  ;;  %v5009_v30 = vpop.permute.xlu1 %1259  ;;  %v1184_v36 = vrot.slane %v4870_v14, %v4831_v1 }
 0x151   :  { %v3925_v33 = vpop.f32.mrb[28].mxu0  ;;  %v1793_v2 = vmax.bf16 %v5651_v11, %v1761_v20  ;;  %v4980_v27 = vpop.permute.xlu0 %1439 }
 0x152   :  { %v550_v51 = vpop.f32.mrb[29].mxu0 }
 0x153   :  { %v3926_v38 = vpop.f32.mrb[30].mxu0  ;;  %3623 = vmatprep.subr.bf16.mxu0 %v1793_v2  ;;  %3963 = vmatprep.subr.bf16.mxu1 %v1793_v2 }
 0x154   :  { %v772_v7 = vpack.c.bf16 %v3926_v38, %v3925_v33  ;;  %v553_v9 = vpop.f32.mrb[31].mxu0  ;;  %3624 = vmatpush3.bf16.msra.mxu0 %v1785_v21  ;;  %3971 = vmatpush3.bf16.msra.mxu1 %v1785_v21  ;;  %v4103_v33 = vld [vmem:[%s5640_s3 + $0x44] ss:$16 sps:$4 sm:$0xff]   ;;  %v5033_v2 = vpop.permute.xlu1 %1475 }
 0x155   :  { %v771_v31 = vpack.c.bf16 %v553_v9, %v550_v51  ;;  %3625 = vmatprep.subr.bf16.mxu0 %v1794_v55  ;;  %3964 = vmatprep.subr.bf16.mxu1 %v1794_v55  ;;  %v5005_v50 = vpop.permute.xlu0 %1247  ;;  %v4064_v9 = vld [vmem:[%s5640_s3 + $0xe4] ss:$16 sps:$4 sm:$0xff]  }
 0x156   :  { %v1764_v5 = vadd.bf16 %v3432_v53, %v772_v7  ;;  %v4107_v7 = vld [vmem:[%s5640_s3 + $0x40] ss:$16 sps:$4 sm:$0xff]  }
 0x157   :  { %v1763_v43 = vadd.bf16 %v3431_v47, %v771_v31  ;;  %v4109_v47 = vld [vmem:[%s5640_s3 + $0x64] ss:$16 sps:$4 sm:$0xff]  }
 0x158   :  { %3626 = vmatpush3.bf16.msra.mxu0 %v1786_v13  ;;  %3972 = vmatpush3.bf16.msra.mxu1 %v1786_v13  ;;  %v1796_v10 = vmax.bf16 %v5651_v11, %v1764_v5  ;;  %v5049_v58 = vpop.permute.xlu1 %1283 }
 0x159   :  { %v4968_v42 = vpop.f32.mrb[32].mxu0  ;;  %v1795_v23 = vmax.bf16 %v5651_v11, %v1763_v43  ;;  %v5025_v57 = vpop.permute.xlu0 %1463 }
 0x15a   :  { %v4975_v48 = vpop.f32.mrb[33].mxu0 }
 0x15b   :  { %v4977_v4 = vpop.f32.mrb[34].mxu0  ;;  %3627 = vmatprep.subr.bf16.mxu0 %v1795_v23  ;;  %3965 = vmatprep.subr.bf16.mxu1 %v1795_v23  ;;  %v4066_v23 = vld [vmem:[%s5640_s3 + $0xe0] ss:$16 sps:$4 sm:$0xff]  }
 0x15c   :  { %v774_v28 = vpack.c.bf16 %v4977_v4, %v4968_v42  ;;  %v4984_v18 = vpop.f32.mrb[35].mxu0  ;;  %3628 = vmatpush3.bf16.msra.mxu0 %v1787_v17  ;;  %3973 = vmatpush3.bf16.msra.mxu1 %v1787_v17  ;;  %v5075_v43 = vpop.permute.xlu1 %1499  ;;  %v1196_v17 = vrot.slane %v4876_v62, %v4831_v1 }
 0x15d   :  { %v773_v6 = vpack.c.bf16 %v4984_v18, %v4975_v48  ;;  %3629 = vmatprep.subr.bf16.mxu0 %v1796_v10  ;;  %3966 = vmatprep.subr.bf16.mxu1 %v1796_v10  ;;  %v5047_v55 = vpop.permute.xlu0 %1271  ;;  %v4067_v10 = vld [vmem:[%s5640_s3 + $0x104] ss:$16 sps:$4 sm:$0xff]   ;;  %v1460_v18 = vrot.slane %v4986_v63, %v4831_v1  ;;  %v1256_v63 = vrot.slane %v5005_v50, %v4831_v1 }
 0x15e   :  { %v4070_v48 = vld [vmem:[%s5640_s3 + $0x124] ss:$16 sps:$4 sm:$0xff]   ;;  %v1280_v50 = vrot.slane %v5047_v55, %v4831_v1  ;;  %v1508_v55 = vrot.slane %v5075_v43, %v4831_v1 }
 0x160   :  { %3630 = vmatpush3.bf16.msra.mxu0 %v1788_v49  ;;  %3974 = vmatpush3.bf16.msra.mxu1 %v1788_v49  ;;  %v5659_v49 = vld [vmem:[#allocation4_spill] sm:$0xff] }
 0x161   :  { %v5003_v15 = vpop.f32.mrb[36].mxu0  ;;  %v5069_v40 = vpop.permute.xlu0 %1487 }
 0x162   :  { %v5007_v16 = vpop.f32.mrb[37].mxu0 }
 0x163   :  { %v5011_v32 = vpop.f32.mrb[38].mxu0  ;;  %2262 = vmatmul.mubr.bf16.vlgmr.msra.gmra.mrb[0].mxu1 %v4055_v39  ;;  %2230 = vmatmul.mubr.bf16.vlgmr.msra.gmra.mrb[64].mxu0 %v4091_v41  ;;  %v1376_v39 = vrot.slane %v5659_v49, %v4831_v1  ;;  %v5660_v41 = vld [vmem:[#allocation5_spill] sm:$0xff] }
 0x164   :  { %v776_v19 = vpack.c.bf16 %v5011_v32, %v5003_v15  ;;  %v5015_v20 = vpop.f32.mrb[39].mxu0  ;;  %2269 = vmatprep.mubr.bf16.mxu1 %v4058_v34  ;;  %2237 = vmatprep.mubr.bf16.mxu0 %v4097_v44  ;;  %v1388_v34 = vrot.slane %v5660_v41, %v4831_v1  ;;  %v1400_v44 = vrot.slane %v4896_v35, %v4831_v1 }
 0x165   :  { %v775_v60 = vpack.c.bf16 %v5015_v20, %v5007_v16  ;;  %v4073_v16 = vld [vmem:[%s5640_s3 + $0x144] ss:$16 sps:$4 sm:$0xff]   ;;  %v1484_v20 = vrot.slane %v5033_v2, %v4831_v1 }
 0x169   :  { %v5035_v37 = vpop.f32.mrb[40].mxu0 }
 0x16a   :  { %v5037_v8 = vpop.f32.mrb[41].mxu0 }
 0x16b   :  { %v5039_v21 = vpop.f32.mrb[42].mxu0  ;;  %2270 = vmatmul.mubr.bf16.gmra.mrb[4].mxu1 %v4060_v29  ;;  %2238 = vmatmul.mubr.bf16.gmra.mrb[68].mxu0 %v4101_v52  ;;  %v1412_v29 = vrot.slane %v4898_v54, %v4831_v1  ;;  %v5100_v52 = vpop.permute.xlu0 %1295  ;;  %v3441_v54 = vcombine.low %v1376_v39, %v1388_v34 }
 0x16c   :  { %v778_v51 = vpack.c.bf16 %v5039_v21, %v5035_v37  ;;  %v5043_v22 = vpop.f32.mrb[43].mxu0  ;;  %2277 = vmatprep.mubr.bf16.mxu1 %v4061_v45  ;;  %2245 = vmatprep.mubr.bf16.mxu0 %v4103_v33  ;;  %v5102_v45 = vpop.permute.xlu1 %1307 }
 0x16d   :  { %v777_v38 = vpack.c.bf16 %v5043_v22, %v5037_v8  ;;  %v3442_v49 = vcombine.low %v1400_v44, %v1412_v29  ;;  %v1316_v43 = vrot.slane %v5102_v45, %v4831_v1  ;;  %v4076_v8 = vld [vmem:[%s5640_s3 + $0x164] ss:$16 sps:$4 sm:$0xff]  }
 0x16f   :  { %v5120_v39 = vpop.permute.xlu0 %1511 }
 0x171   :  { %v5063_v53 = vpop.f32.mrb[44].mxu0 }
 0x172   :  { %v5065_v31 = vpop.f32.mrb[45].mxu0 }
 0x173   :  { %v5067_v13 = vpop.f32.mrb[46].mxu0  ;;  %2278 = vmatmul.mubr.bf16.gmra.mrb[8].mxu1 %v4063_v61  ;;  %2246 = vmatmul.mubr.bf16.gmra.mrb[72].mxu0 %v4107_v7  ;;  %v3433_v61 = vcombine.low %v1184_v36, %v1196_v17  ;;  %v1208_v7 = vrot.slane %v4917_v59, %v4831_v1 }
 0x174   :  { %v5073_v5 = vpop.f32.mrb[47].mxu0  ;;  %2285 = vmatprep.mubr.bf16.mxu1 %v4064_v9  ;;  %2253 = vmatprep.mubr.bf16.mxu0 %v4109_v47  ;;  %v1220_v9 = vrot.slane %v4923_v24, %v4831_v1  ;;  %v4069_v24 = vld [vmem:[%s5640_s3 + $0x100] ss:$16 sps:$4 sm:$0xff]  }
 0x175   :  { %v779_v26 = vpack.c.bf16 %v5073_v5, %v5065_v31  ;;  %v1765_v3 = vadd.bf16 %v3433_v61, %v773_v6  ;;  %v5131_v6 = vpop.permute.xlu1 %1523 }
 0x176   :  { %v3434_v17 = vcombine.low %v1208_v7, %v1220_v9  ;;  %v1532_v22 = vrot.slane %v5131_v6, %v4831_v1 }
 0x177   :  { %v1797_v29 = vmax.bf16 %v5651_v11, %v1765_v3  ;;  %v1320_v3 = vpop.permute.xlu0 %1319 }
 0x178   :  { %v1766_v44 = vadd.bf16 %v3434_v17, %v774_v28 }
 0x179   :  { %v3945_v14 = vpop.f32.mrb[48].mxu0 }
 0x17a   :  { %v630_v62 = vpop.f32.mrb[49].mxu0  ;;  %v1798_v9 = vmax.bf16 %v5651_v11, %v1766_v44 }
 0x17b   :  { %v3946_v33 = vpop.f32.mrb[50].mxu0  ;;  %2286 = vmatmul.mubr.bf16.gmra.mrb[12].mxu1 %v4066_v23  ;;  %2254 = vmatmul.mubr.bf16.gmra.mrb[76].mxu0 %v4113_v56  ;;  %v1232_v23 = vrot.slane %v4960_v12, %v4831_v1  ;;  %v1244_v56 = vrot.slane %v4966_v25, %v4831_v1  ;;  %v1436_v12 = vrot.slane %v4948_v46, %v4831_v1 }
 0x17c   :  { %v782_v35 = vpack.c.bf16 %v3946_v33, %v3945_v14  ;;  %v633_v47 = vpop.f32.mrb[51].mxu0  ;;  %2293 = vmatprep.mubr.bf16.mxu1 %v4067_v10  ;;  %v1424_v10 = vrot.slane %v4940_v0, %v4831_v1  ;;  %v1448_v25 = vrot.slane %v4980_v27, %v4831_v1  ;;  %v1268_v33 = vrot.slane %v5009_v30, %v4831_v1 }
 0x17d   :  { %v781_v41 = vpack.c.bf16 %v633_v47, %v630_v62  ;;  %v3435_v62 = vcombine.low %v1232_v23, %v1244_v56  ;;  %v1292_v30 = vrot.slane %v5049_v58, %v4831_v1  ;;  %v1332_v47 = vpop.permute.xlu1 %1331  ;;  %v1472_v56 = vrot.slane %v5025_v57, %v4831_v1 }
 0x17e   :  { %v1774_v59 = vadd.bf16 %v3442_v49, %v782_v35  ;;  %v3443_v42 = vcombine.low %v1424_v10, %v1436_v12  ;;  %v3444_v4 = vcombine.low %v1448_v25, %v1460_v18  ;;  %v3436_v23 = vcombine.low %v1256_v63, %v1268_v33 }
 0x17f   :  { %v1773_v36 = vadd.bf16 %v3441_v54, %v781_v41  ;;  %v1767_v35 = vadd.bf16 %v3435_v62, %v775_v60  ;;  %v4072_v41 = vld [vmem:[%s5640_s3 + $0x120] ss:$16 sps:$4 sm:$0xff]   ;;  %v1496_v60 = vrot.slane %v5069_v40, %v4831_v1  ;;  %v3437_v17 = vcombine.low %v1280_v50, %v1292_v30 }
 0x180   :  { %v1806_v27 = vmax.bf16 %v5651_v11, %v1774_v59  ;;  %v1768_v57 = vadd.bf16 %v3436_v23, %v776_v19  ;;  %v1304_v40 = vrot.slane %v5100_v52, %v4831_v1  ;;  %v3445_v15 = vcombine.low %v1472_v56, %v1484_v20  ;;  %v4078_v23 = vld [vmem:[%s5640_s3 + $0x160] ss:$16 sps:$4 sm:$0xff]  }
 0x181   :  { %v3949_v34 = vpop.f32.mrb[52].mxu0  ;;  %v1805_v0 = vmax.bf16 %v5651_v11, %v1773_v36  ;;  %v1799_v36 = vmax.bf16 %v5651_v11, %v1767_v35  ;;  %v3446_v32 = vcombine.low %v1496_v60, %v1508_v55  ;;  %v1548_v19 = vpop.permute.xlu1 %1547  ;;  %v1328_v52 = vrot.slane %v1320_v3, %v4831_v1 }
 0x182   :  { %v646_v14 = vpop.f32.mrb[53].mxu0  ;;  %v1340_v45 = vrot.slane %v1332_v47, %v4831_v1  ;;  %v3438_v62 = vcombine.low %v1304_v40, %v1316_v43  ;;  %v5661_v60 = vpack.c.bf16 %v5067_v13, %v5063_v53  ;;  %v4082_v53 = vld [vmem:[%s5640_s3 + $0x1a4] ss:$16 sps:$4 sm:$0xff]   ;;  %v4084_v13 = vld [vmem:[%s5640_s3 + $0x1a0] ss:$16 sps:$4 sm:$0xff]  }
 0x183   :  { %v3950_v46 = vpop.f32.mrb[54].mxu0  ;;  %2294 = vmatmul.mubr.bf16.gmra.mrb[16].mxu1 %v4069_v24  ;;  %3727 = vmatprep.subr.bf16.mxu1 %v1805_v0  ;;  %v1769_v0 = vadd.bf16 %v3437_v17, %v777_v38  ;;  %v4096_v17 = vld [vmem:[%s5640_s3 + $0xc] ss:$16 sps:$4 sm:$0xff]   ;;  %v4102_v40 = vld [vmem:[%s5640_s3 + $0x28] ss:$16 sps:$4 sm:$0xff]  }
 0x184   :  { %v784_v61 = vpack.c.bf16 %v3950_v46, %v3949_v34  ;;  %v649_v7 = vpop.f32.mrb[55].mxu0  ;;  %3728 = vmatpush3.bf16.msra.mxu1 %v1797_v29  ;;  %2301 = vmatprep.mubr.bf16.mxu1 %v4070_v48  ;;  %v1536_v48 = vpop.permute.xlu0 %1535  ;;  %v1800_v34 = vmax.bf16 %v5651_v11, %v1768_v57  ;;  %v1520_v46 = vrot.slane %v5120_v39, %v4831_v1  ;;  %v4087_v57 = vld [vmem:[%s5640_s3 + $0x1c0] ss:$16 sps:$4 sm:$0xff]   ;;  %v4105_v43 = vld [vmem:[%s5640_s3 + $0x4c] ss:$16 sps:$4 sm:$0xff]  }
 0x185   :  { %v783_v28 = vpack.c.bf16 %v649_v7, %v646_v14  ;;  %3729 = vmatprep.subr.bf16.mxu1 %v1806_v27  ;;  %v4075_v14 = vld [vmem:[%s5640_s3 + $0x140] ss:$16 sps:$4 sm:$0xff]   ;;  %v1544_v38 = vrot.slane %v1536_v48, %v4831_v1  ;;  %v1556_v27 = vrot.slane %v1548_v19, %v4831_v1  ;;  %v1770_v39 = vadd.bf16 %v3438_v62, %v778_v51  ;;  %v4108_v48 = vld [vmem:[%s5640_s3 + $0x48] ss:$16 sps:$4 sm:$0xff]   ;;  %v4118_v19 = vld [vmem:[%s5640_s3 + $0xac] ss:$16 sps:$4 sm:$0xff]  }
 0x186   :  { %v1776_v54 = vadd.bf16 %v3444_v4, %v784_v61  ;;  %v1801_v7 = vmax.bf16 %v5651_v11, %v1769_v0  ;;  %v3439_v4 = vcombine.low %v1328_v52, %v1340_v45  ;;  %v3447_v37 = vcombine.low %v1520_v46, %v1532_v22  ;;  %v4123_v0 = vld [vmem:[%s5640_s3 + $0xc8] ss:$16 sps:$4 sm:$0xff]   ;;  %v4124_v52 = vld [vmem:[%s5640_s3 + $0xec] ss:$16 sps:$4 sm:$0xff]  }
 0x187   :  { %v1775_v49 = vadd.bf16 %v3443_v42, %v783_v28  ;;  %v1356_v28 = vpop.permute.xlu1 %1355  ;;  %v3448_v21 = vcombine.low %v1544_v38, %v1556_v27  ;;  %v1802_v47 = vmax.bf16 %v5651_v11, %v1770_v39  ;;  %v4126_v45 = vld [vmem:[%s5640_s3 + $0xe8] ss:$16 sps:$4 sm:$0xff]   ;;  %v4133_v46 = vld [vmem:[%s5640_s3 + $0x14c] ss:$16 sps:$4 sm:$0xff]  }
 0x188   :  { %3730 = vmatpush3.bf16.msra.mxu1 %v1798_v9  ;;  %v1808_v2 = vmax.bf16 %v5651_v11, %v1776_v54  ;;  %v1344_v61 = vpop.permute.xlu0 %1343  ;;  %v1364_v35 = vrot.slane %v1356_v28, %v4831_v1  ;;  %v1771_v54 = vadd.bf16 %v3439_v4, %v779_v26  ;;  %v4132_v62 = vld [vmem:[%s5640_s3 + $0x128] ss:$16 sps:$4 sm:$0xff]   ;;  %v4136_v22 = vld [vmem:[%s5640_s3 + $0x16c] ss:$16 sps:$4 sm:$0xff]  }
 0x189   :  { %v3953_v58 = vpop.f32.mrb[56].mxu0  ;;  %v1807_v59 = vmax.bf16 %v5651_v11, %v1775_v49  ;;  %v1352_v9 = vrot.slane %v1344_v61, %v4831_v1  ;;  %v4138_v38 = vld [vmem:[%s5640_s3 + $0x168] ss:$16 sps:$4 sm:$0xff]   ;;  %v4139_v27 = vld [vmem:[%s5640_s3 + $0x18c] ss:$16 sps:$4 sm:$0xff]  }
 0x18a   :  { %v662_v24 = vpop.f32.mrb[57].mxu0  ;;  %v1803_v31 = vmax.bf16 %v5651_v11, %v1771_v54  ;;  %v4144_v61 = vld [vmem:[%s5640_s3 + $0x1a8] ss:$16 sps:$4 sm:$0xff]   ;;  %v4145_v39 = vld [vmem:[%s5640_s3 + $0x1cc] ss:$16 sps:$4 sm:$0xff]  }
 0x18b   :  { %v3954_v10 = vpop.f32.mrb[58].mxu0  ;;  %2302 = vmatmul.mubr.bf16.gmra.mrb[20].mxu1 %v4072_v41  ;;  %3731 = vmatprep.subr.bf16.mxu1 %v1807_v59  ;;  %v3440_v56 = vcombine.low %v1352_v9, %v1364_v35  ;;  %v4085_v59 = vld [vmem:[%s5640_s3 + $0x1c4] ss:$16 sps:$4 sm:$0xff]  }
 0x18c   :  { %v786_v12 = vpack.c.bf16 %v3954_v10, %v3953_v58  ;;  %v665_v25 = vpop.f32.mrb[59].mxu0  ;;  %3732 = vmatpush3.bf16.msra.mxu1 %v1799_v36  ;;  %2309 = vmatprep.mubr.bf16.mxu1 %v4073_v16  ;;  %v4079_v16 = vld [vmem:[%s5640_s3 + $0x184] ss:$16 sps:$4 sm:$0xff]   ;;  %v4081_v58 = vld [vmem:[%s5640_s3 + $0x180] ss:$16 sps:$4 sm:$0xff]  }
 0x18d   :  { %v785_v18 = vpack.c.bf16 %v665_v25, %v662_v24  ;;  %3733 = vmatprep.subr.bf16.mxu1 %v1808_v2  ;;  %v1772_v55 = vadd.bf16 %v3440_v56, %v5661_v60  ;;  %v4088_v36 = vld [vmem:[%s5640_s3 + $0x1e4] ss:$16 sps:$4 sm:$0xff]   ;;  %v4090_v24 = vld [vmem:[%s5640_s3 + $0x1e0] ss:$16 sps:$4 sm:$0xff]   ;;  %v4094_v10 = vld [vmem:[%s5640_s3 + $0x8] ss:$16 sps:$4 sm:$0xff]  }
 0x18e   :  { %v1778_v44 = vadd.bf16 %v3446_v32, %v786_v12  ;;  %v4099_v2 = vld [vmem:[%s5640_s3 + $0x2c] ss:$16 sps:$4 sm:$0xff]   ;;  %v4114_v25 = vld [vmem:[%s5640_s3 + $0x68] ss:$16 sps:$4 sm:$0xff]  }
 0x18f   :  { %v1777_v29 = vadd.bf16 %v3445_v15, %v785_v18  ;;  %v1804_v26 = vmax.bf16 %v5651_v11, %v1772_v55  ;;  %v4111_v12 = vld [vmem:[%s5640_s3 + $0x6c] ss:$16 sps:$4 sm:$0xff]   ;;  %v4117_v32 = vld [vmem:[%s5640_s3 + $0x88] ss:$16 sps:$4 sm:$0xff]  }
 0x190   :  { %3734 = vmatpush3.bf16.msra.mxu1 %v1800_v34  ;;  %v1810_v6 = vmax.bf16 %v5651_v11, %v1778_v44  ;;  %v4115_v15 = vld [vmem:[%s5640_s3 + $0x8c] ss:$16 sps:$4 sm:$0xff]   ;;  %v4120_v18 = vld [vmem:[%s5640_s3 + $0xa8] ss:$16 sps:$4 sm:$0xff]  }
 0x191   :  { %v3957_v63 = vpop.f32.mrb[60].mxu0  ;;  %v1809_v33 = vmax.bf16 %v5651_v11, %v1777_v29  ;;  %v4121_v34 = vld [vmem:[%s5640_s3 + $0xcc] ss:$16 sps:$4 sm:$0xff]   ;;  %v4129_v29 = vld [vmem:[%s5640_s3 + $0x108] ss:$16 sps:$4 sm:$0xff]  }
 0x192   :  { %v678_v42 = vpop.f32.mrb[61].mxu0  ;;  %v4127_v44 = vld [vmem:[%s5640_s3 + $0x10c] ss:$16 sps:$4 sm:$0xff]  }
 0x193   :  { %v3958_v3 = vpop.f32.mrb[62].mxu0  ;;  %2310 = vmatmul.mubr.bf16.gmra.mrb[24].mxu1 %v4075_v14  ;;  %3735 = vmatprep.subr.bf16.mxu1 %v1809_v33  ;;  %v4130_v14 = vld [vmem:[%s5640_s3 + $0x12c] ss:$16 sps:$4 sm:$0xff]  }
 0x194   :  { %v788_v50 = vpack.c.bf16 %v3958_v3, %v3957_v63  ;;  %v681_v30 = vpop.f32.mrb[63].mxu0  ;;  %3736 = vmatpush3.bf16.msra.mxu1 %v1801_v7  ;;  %2317 = vmatprep.mubr.bf16.mxu1 %v4076_v8  ;;  %v4135_v8 = vld [vmem:[%s5640_s3 + $0x148] ss:$16 sps:$4 sm:$0xff]   ;;  %v4142_v33 = vld [vmem:[%s5640_s3 + $0x1ac] ss:$16 sps:$4 sm:$0xff]  }
 0x195   :  { %v787_v51 = vpack.c.bf16 %v681_v30, %v678_v42  ;;  %3737 = vmatprep.subr.bf16.mxu1 %v1810_v6  ;;  %v4141_v63 = vld [vmem:[%s5640_s3 + $0x188] ss:$16 sps:$4 sm:$0xff]   ;;  %v4148_v42 = vld [vmem:[%s5640_s3 + $0x1ec] ss:$16 sps:$4 sm:$0xff]  }
 0x196   :  { %v1780_v49 = vadd.bf16 %v3448_v21, %v788_v50  ;;  %v4147_v7 = vld [vmem:[%s5640_s3 + $0x1c8] ss:$16 sps:$4 sm:$0xff]  }
 0x197   :  { %v1779_v41 = vadd.bf16 %v3447_v37, %v787_v51  ;;  %v4150_v3 = vld [vmem:[%s5640_s3 + $0x1e8] ss:$16 sps:$4 sm:$0xff]  }
 0x198   :  { %3738 = vmatpush3.bf16.msra.mxu1 %v1802_v47  ;;  %v1812_v5 = vmax.bf16 %v5651_v11, %v1780_v49 }
 0x199   :  { %v1811_v20 = vmax.bf16 %v5651_v11, %v1779_v41 }
 0x19b   :  { %2318 = vmatmul.mubr.bf16.gmra.mrb[28].mxu1 %v4078_v23  ;;  %3739 = vmatprep.subr.bf16.mxu1 %v1811_v20 }
 0x19c   :  { %3740 = vmatpush3.bf16.msra.mxu1 %v1803_v31  ;;  %2325 = vmatprep.mubr.bf16.mxu1 %v4079_v16 }
 0x19d   :  { %3741 = vmatprep.subr.bf16.mxu1 %v1812_v5 }
 0x1a0   :  { %3742 = vmatpush3.bf16.msra.mxu1 %v1804_v26 }
 0x1a3   :  { %2326 = vmatmul.mubr.bf16.gmra.mrb[32].mxu1 %v4081_v58 }
 0x1a4   :  { %2333 = vmatprep.mubr.bf16.mxu1 %v4082_v53 }
 0x1ab   :  { %2334 = vmatmul.mubr.bf16.gmra.mrb[36].mxu1 %v4084_v13 }
 0x1ac   :  { %2341 = vmatprep.mubr.bf16.mxu1 %v4085_v59 }
 0x1b3   :  { %2342 = vmatmul.mubr.bf16.gmra.mrb[40].mxu1 %v4087_v57 }
 0x1b4   :  { %2349 = vmatprep.mubr.bf16.mxu1 %v4088_v36 }
 0x1bb   :  { %2350 = vmatmul.mubr.bf16.gmra.mrb[44].mxu1 %v4090_v24 }
 0x1bc   :  { %2390 = vmatprep.mubr.bf16.mxu1 %v4096_v17 }
 0x1c3   :  { %2391 = vmatmul.mubr.bf16.vlgmr.msra.gmra.mrb[48].mxu1 %v4094_v10 }
 0x1c4   :  { %2398 = vmatprep.mubr.bf16.mxu1 %v4099_v2 }
 0x1cb   :  { %2399 = vmatmul.mubr.bf16.gmra.mrb[52].mxu1 %v4102_v40 }
 0x1cc   :  { %2406 = vmatprep.mubr.bf16.mxu1 %v4105_v43 }
 0x1d3   :  { %2407 = vmatmul.mubr.bf16.gmra.mrb[56].mxu1 %v4108_v48 }
 0x1d4   :  { %2414 = vmatprep.mubr.bf16.mxu1 %v4111_v12 }
 0x1db   :  { %2415 = vmatmul.mubr.bf16.gmra.mrb[60].mxu1 %v4114_v25 }
 0x1dc   :  { %2422 = vmatprep.mubr.bf16.mxu1 %v4115_v15 }
 0x1e3   :  { %2423 = vmatmul.mubr.bf16.gmra.mrb[64].mxu1 %v4117_v32 }
 0x1e4   :  { %2430 = vmatprep.mubr.bf16.mxu1 %v4118_v19 }
 0x1eb   :  { %2431 = vmatmul.mubr.bf16.gmra.mrb[68].mxu1 %v4120_v18 }
 0x1ec   :  { %2438 = vmatprep.mubr.bf16.mxu1 %v4121_v34 }
 0x1f3   :  { %2439 = vmatmul.mubr.bf16.gmra.mrb[72].mxu1 %v4123_v0 }
 0x1f4   :  { %2446 = vmatprep.mubr.bf16.mxu1 %v4124_v52 }
 0x1fb   :  { %2447 = vmatmul.mubr.bf16.gmra.mrb[76].mxu1 %v4126_v45 }
 0x1fc   :  { %2454 = vmatprep.mubr.bf16.mxu1 %v4127_v44 }
 0x203   :  { %2455 = vmatmul.mubr.bf16.gmra.mrb[80].mxu1 %v4129_v29 }
 0x204   :  { %2462 = vmatprep.mubr.bf16.mxu1 %v4130_v14 }
 0x20b   :  { %2463 = vmatmul.mubr.bf16.gmra.mrb[84].mxu1 %v4132_v62 }
 0x20c   :  { %2470 = vmatprep.mubr.bf16.mxu1 %v4133_v46 }
 0x213   :  { %2471 = vmatmul.mubr.bf16.gmra.mrb[88].mxu1 %v4135_v8 }
 0x214   :  { %2478 = vmatprep.mubr.bf16.mxu1 %v4136_v22 }
 0x21b   :  { %2479 = vmatmul.mubr.bf16.gmra.mrb[92].mxu1 %v4138_v38 }
 0x21c   :  { %2486 = vmatprep.mubr.bf16.mxu1 %v4139_v27 }
 0x223   :  { %2487 = vmatmul.mubr.bf16.gmra.mrb[96].mxu1 %v4141_v63 }
 0x224   :  { %2494 = vmatprep.mubr.bf16.mxu1 %v4142_v33 }
 0x22b   :  { %2495 = vmatmul.mubr.bf16.gmra.mrb[100].mxu1 %v4144_v61 }
 0x22c   :  { %2502 = vmatprep.mubr.bf16.mxu1 %v4145_v39 }
 0x233   :  { %2503 = vmatmul.mubr.bf16.gmra.mrb[104].mxu1 %v4147_v7 }
 0x234   :  { %2510 = vmatprep.mubr.bf16.mxu1 %v4148_v42 }
 0x236   :  { %v3655_v4 = vpop.f32.mrb[0].mxu1  ;;  %v3631_v28 = vpop.f32.mrb[64].mxu0 }
 0x237   :  { %v3656_v6 = vpop.f32.mrb[1].mxu1  ;;  %v3632_v9 = vpop.f32.mrb[65].mxu0 }
 0x238   :  { %v5335_v35 = vadd.f32 %v3656_v6, %v3655_v4  ;;  %v3658_v50 = vpop.f32.mrb[2].mxu1  ;;  %v5337_v30 = vadd.f32 %v3632_v9, %v3631_v28  ;;  %v3634_v37 = vpop.f32.mrb[66].mxu0 }
 0x239   :  { %v3659_v21 = vpop.f32.mrb[3].mxu1  ;;  %v3635_v51 = vpop.f32.mrb[67].mxu0 }
 0x23a   :  { %v5339_v47 = vadd.f32 %v3659_v21, %v3658_v50  ;;  %v5341_v54 = vadd.f32 %v3635_v51, %v3634_v37 }
 0x23b   :  { %2511 = vmatmul.mubr.bf16.gmra.mrb[108].mxu1 %v4150_v3 }
 0x23e   :  { %v3661_v49 = vpop.f32.mrb[4].mxu1  ;;  %v3637_v41 = vpop.f32.mrb[68].mxu0 }
 0x23f   :  { %v3662_v23 = vpop.f32.mrb[5].mxu1  ;;  %v3638_v56 = vpop.f32.mrb[69].mxu0 }
 0x240   :  { %v5343_v16 = vadd.f32 %v3662_v23, %v3661_v49  ;;  %v3664_v20 = vpop.f32.mrb[6].mxu1  ;;  %v5345_v60 = vadd.f32 %v3638_v56, %v3637_v41  ;;  %v3640_v55 = vpop.f32.mrb[70].mxu0 }
 0x241   :  { %v3665_v31 = vpop.f32.mrb[7].mxu1  ;;  %v3641_v5 = vpop.f32.mrb[71].mxu0 }
 0x242   :  { %v5347_v26 = vadd.f32 %v3665_v31, %v3664_v20  ;;  %v5349_v58 = vadd.f32 %v3641_v5, %v3640_v55 }
 0x246   :  { %v3667_v53 = vpop.f32.mrb[8].mxu1  ;;  %v3643_v13 = vpop.f32.mrb[72].mxu0 }
 0x247   :  { %v3668_v59 = vpop.f32.mrb[9].mxu1  ;;  %v3644_v57 = vpop.f32.mrb[73].mxu0 }
 0x248   :  { %v5351_v36 = vadd.f32 %v3668_v59, %v3667_v53  ;;  %v3670_v24 = vpop.f32.mrb[10].mxu1  ;;  %v5353_v17 = vadd.f32 %v3644_v57, %v3643_v13  ;;  %v3646_v10 = vpop.f32.mrb[74].mxu0 }
 0x249   :  { %v3671_v2 = vpop.f32.mrb[11].mxu1  ;;  %v3647_v40 = vpop.f32.mrb[75].mxu0 }
 0x24a   :  { %v5355_v43 = vadd.f32 %v3671_v2, %v3670_v24  ;;  %v5357_v48 = vadd.f32 %v3647_v40, %v3646_v10 }
 0x24e   :  { %v3673_v12 = vpop.f32.mrb[12].mxu1  ;;  %v3649_v25 = vpop.f32.mrb[76].mxu0 }
 0x24f   :  { %v3674_v15 = vpop.f32.mrb[13].mxu1  ;;  %v3650_v32 = vpop.f32.mrb[77].mxu0 }
 0x250   :  { %v5359_v19 = vadd.f32 %v3674_v15, %v3673_v12  ;;  %v3676_v18 = vpop.f32.mrb[14].mxu1  ;;  %v5361_v34 = vadd.f32 %v3650_v32, %v3649_v25  ;;  %v3652_v0 = vpop.f32.mrb[78].mxu0 }
 0x251   :  { %v3677_v52 = vpop.f32.mrb[15].mxu1  ;;  %v3653_v45 = vpop.f32.mrb[79].mxu0 }
 0x252   :  { %v5363_v44 = vadd.f32 %v3677_v52, %v3676_v18  ;;  %v5365_v29 = vadd.f32 %v3653_v45, %v3652_v0 }
 0x256   :  { %v3679_v14 = vpop.f32.mrb[16].mxu1 }
 0x257   :  { %v3680_v62 = vpop.f32.mrb[17].mxu1 }
 0x258   :  { %v5367_v46 = vadd.f32 %v3680_v62, %v3679_v14  ;;  %v3682_v8 = vpop.f32.mrb[18].mxu1 }
 0x259   :  { %v3683_v22 = vpop.f32.mrb[19].mxu1 }
 0x25a   :  { %v5369_v38 = vadd.f32 %v3683_v22, %v3682_v8 }
 0x25e   :  { %v3685_v27 = vpop.f32.mrb[20].mxu1 }
 0x25f   :  { %v3686_v63 = vpop.f32.mrb[21].mxu1 }
 0x260   :  { %v5371_v33 = vadd.f32 %v3686_v63, %v3685_v27  ;;  %v3688_v61 = vpop.f32.mrb[22].mxu1 }
 0x261   :  { %v3689_v39 = vpop.f32.mrb[23].mxu1 }
 0x262   :  { %v5373_v7 = vadd.f32 %v3689_v39, %v3688_v61 }
 0x266   :  { %v3691_v42 = vpop.f32.mrb[24].mxu1 }
 0x267   :  { %v3692_v4 = vpop.f32.mrb[25].mxu1 }
 0x268   :  { %v5375_v28 = vadd.f32 %v3692_v4, %v3691_v42  ;;  %v3694_v3 = vpop.f32.mrb[26].mxu1 }
 0x269   :  { %v3695_v6 = vpop.f32.mrb[27].mxu1 }
 0x26a   :  { %v5377_v9 = vadd.f32 %v3695_v6, %v3694_v3 }
 0x26e   :  { %v3697_v50 = vpop.f32.mrb[28].mxu1 }
 0x26f   :  { %v3698_v37 = vpop.f32.mrb[29].mxu1 }
 0x270   :  { %v5379_v21 = vadd.f32 %v3698_v37, %v3697_v50  ;;  %v3700_v51 = vpop.f32.mrb[30].mxu1  ;;  %v4153_v50 = vld [vmem:[%s5641_s5 + $0x4] ss:$8 sps:$4 sm:$0xff]  }
 0x271   :  { %v3701_v49 = vpop.f32.mrb[31].mxu1  ;;  %3215 = vmatprep.mubr.bf16.mxu0 %v4153_v50 }
 0x272   :  { %v5381_v41 = vadd.f32 %v3701_v49, %v3700_v51 }
 0x276   :  { %v3703_v23 = vpop.f32.mrb[32].mxu1 }
 0x277   :  { %v3704_v56 = vpop.f32.mrb[33].mxu1 }
 0x278   :  { %v5383_v20 = vadd.f32 %v3704_v56, %v3703_v23  ;;  %v3706_v55 = vpop.f32.mrb[34].mxu1 }
 0x279   :  { %v3707_v31 = vpop.f32.mrb[35].mxu1 }
 0x27a   :  { %v5385_v5 = vadd.f32 %v3707_v31, %v3706_v55 }
 0x27e   :  { %v3709_v53 = vpop.f32.mrb[36].mxu1 }
 0x27f   :  { %v3710_v13 = vpop.f32.mrb[37].mxu1 }
 0x280   :  { %v5387_v59 = vadd.f32 %v3710_v13, %v3709_v53  ;;  %v3712_v57 = vpop.f32.mrb[38].mxu1 }
 0x281   :  { %v3713_v24 = vpop.f32.mrb[39].mxu1 }
 0x282   :  { %v5389_v10 = vadd.f32 %v3713_v24, %v3712_v57 }
 0x286   :  { %v3715_v2 = vpop.f32.mrb[40].mxu1 }
 0x287   :  { %v3716_v40 = vpop.f32.mrb[41].mxu1 }
 0x288   :  { %v5391_v12 = vadd.f32 %v3716_v40, %v3715_v2  ;;  %v3718_v25 = vpop.f32.mrb[42].mxu1 }
 0x289   :  { %v3719_v15 = vpop.f32.mrb[43].mxu1 }
 0x28a   :  { %v5393_v32 = vadd.f32 %v3719_v15, %v3718_v25 }
 0x28e   :  { %v3721_v18 = vpop.f32.mrb[44].mxu1 }
 0x28f   :  { %v3722_v0 = vpop.f32.mrb[45].mxu1 }
 0x290   :  { %v5395_v52 = vadd.f32 %v3722_v0, %v3721_v18  ;;  %v3724_v45 = vpop.f32.mrb[46].mxu1 }
 0x291   :  { %v3725_v14 = vpop.f32.mrb[47].mxu1 }
 0x292   :  { %v5397_v62 = vadd.f32 %v3725_v14, %v3724_v45 }
 0x296   :  { %v3743_v8 = vpop.f32.mrb[48].mxu1 }
 0x297   :  { %v3744_v22 = vpop.f32.mrb[49].mxu1 }
 0x298   :  { %v3745_v27 = vadd.f32 %v3744_v22, %v3743_v8  ;;  %v3746_v63 = vpop.f32.mrb[50].mxu1  ;;  %v5429_v22 = vpop.permute.xlu0 %2761 }
 0x299   :  { %v3747_v61 = vpop.f32.mrb[51].mxu1 }
 0x29a   :  { %v5400_v39 = vadd.f32 %v3745_v27, %v5337_v30  ;;  %v3748_v42 = vadd.f32 %v3747_v61, %v3746_v63 }
 0x29c   :  { %v5403_v4 = vadd.f32 %v3748_v42, %v5341_v54  ;;  %v2570_v50 = vpop.permute.xlu0 %2569 }
 0x29e   :  { %v2551_v3 = vpack.c.bf16 %v5403_v4, %v5400_v39  ;;  %v3749_v6 = vpop.f32.mrb[52].mxu1 }
 0x29f   :  { %v3750_v37 = vpop.f32.mrb[53].mxu1 }
 0x2a0   :  { %v3751_v51 = vadd.f32 %v3750_v37, %v3749_v6  ;;  %v3752_v49 = vpop.f32.mrb[54].mxu1 }
 0x2a1   :  { %v3753_v23 = vpop.f32.mrb[55].mxu1 }
 0x2a2   :  { %v5411_v30 = vadd.f32 %v3751_v51, %v5345_v60  ;;  %v3754_v56 = vadd.f32 %v3753_v23, %v3752_v49 }
 0x2a4   :  { %v5414_v54 = vadd.f32 %v3754_v56, %v5349_v58 }
 0x2a6   :  { %v3755_v31 = vpop.f32.mrb[56].mxu1 }
 0x2a7   :  { %v3756_v53 = vpop.f32.mrb[57].mxu1 }
 0x2a8   :  { %v3757_v13 = vadd.f32 %v3756_v53, %v3755_v31  ;;  %v3758_v57 = vpop.f32.mrb[58].mxu1  ;;  %v5446_v31 = vpop.permute.xlu0 %2785 }
 0x2a9   :  { %v3759_v24 = vpop.f32.mrb[59].mxu1 }
 0x2aa   :  { %v5419_v2 = vadd.f32 %v3757_v13, %v5353_v17  ;;  %v3760_v40 = vadd.f32 %v3759_v24, %v3758_v57  ;;  %v5431_v17 = vpop.permute.xlu1 %2773 }
 0x2ac   :  { %v5422_v25 = vadd.f32 %v3760_v40, %v5357_v48 }
 0x2ae   :  { %v3761_v58 = vpop.f32.mrb[60].mxu1  ;;  %v2582_v51 = vpop.permute.xlu1 %2581 }
 0x2af   :  { %v3762_v15 = vpop.f32.mrb[61].mxu1 }
 0x2b0   :  { %v3763_v18 = vadd.f32 %v3762_v15, %v3761_v58  ;;  %v3764_v0 = vpop.f32.mrb[62].mxu1 }
 0x2b1   :  { %v3765_v45 = vpop.f32.mrb[63].mxu1 }
 0x2b2   :  { %v5427_v14 = vadd.f32 %v3763_v18, %v5361_v34  ;;  %v3766_v8 = vadd.f32 %v3765_v45, %v3764_v0  ;;  %v5448_v13 = vpop.permute.xlu1 %2797 }
 0x2b4   :  { %v5434_v27 = vadd.f32 %v3766_v8, %v5365_v29  ;;  %v2578_v29 = vrot.slane %v2570_v50, %v4831_v1 }
 0x2b6   :  { %v3767_v63 = vpop.f32.mrb[64].mxu1  ;;  %v5458_v18 = vpop.permute.xlu1 %2605 }
 0x2b7   :  { %v3768_v61 = vpop.f32.mrb[65].mxu1 }
 0x2b8   :  { %v3769_v42 = vadd.f32 %v3768_v61, %v3767_v63  ;;  %v3770_v6 = vpop.f32.mrb[66].mxu1 }
 0x2b9   :  { %v3771_v37 = vpop.f32.mrb[67].mxu1 }
 0x2ba   :  { %v5439_v34 = vadd.f32 %v3769_v42, %v5335_v35  ;;  %v3772_v49 = vadd.f32 %v3771_v37, %v3770_v6 }
 0x2bc   :  { %v5442_v23 = vadd.f32 %v3772_v49, %v5339_v47  ;;  %v5456_v47 = vpop.permute.xlu0 %2593 }
 0x2be   :  { %v3773_v56 = vpop.f32.mrb[68].mxu1 }
 0x2bf   :  { %v3774_v53 = vpop.f32.mrb[69].mxu1 }
 0x2c0   :  { %v3775_v57 = vadd.f32 %v3774_v53, %v3773_v56  ;;  %v3776_v24 = vpop.f32.mrb[70].mxu1  ;;  %v5465_v37 = vpop.permute.xlu0 %2809 }
 0x2c1   :  { %v3777_v40 = vpop.f32.mrb[71].mxu1 }
 0x2c2   :  { %v5451_v58 = vadd.f32 %v3775_v57, %v5343_v16  ;;  %v3778_v35 = vadd.f32 %v3777_v40, %v3776_v24 }
 0x2c4   :  { %v5454_v15 = vadd.f32 %v3778_v35, %v5347_v26  ;;  %v5467_v26 = vpop.permute.xlu1 %2821  ;;  %v5474_v35 = vpop.permute.xlu0 %2617 }
 0x2c6   :  { %v3779_v45 = vpop.f32.mrb[72].mxu1 }
 0x2c7   :  { %v3780_v8 = vpop.f32.mrb[73].mxu1 }
 0x2c8   :  { %v3781_v63 = vadd.f32 %v3780_v8, %v3779_v45  ;;  %v3782_v61 = vpop.f32.mrb[74].mxu1 }
 0x2c9   :  { %v3783_v42 = vpop.f32.mrb[75].mxu1 }
 0x2ca   :  { %v5463_v6 = vadd.f32 %v3781_v63, %v5351_v36  ;;  %v3784_v16 = vadd.f32 %v3783_v42, %v3782_v61  ;;  %v5476_v36 = vpop.permute.xlu1 %2629 }
 0x2cc   :  { %v5470_v49 = vadd.f32 %v3784_v16, %v5355_v43  ;;  %v5486_v16 = vpop.permute.xlu0 %2833 }
 0x2ce   :  { %v3785_v53 = vpop.f32.mrb[76].mxu1 }
 0x2cf   :  { %v3786_v57 = vpop.f32.mrb[77].mxu1 }
 0x2d0   :  { %v3787_v24 = vadd.f32 %v3786_v57, %v3785_v53  ;;  %v3788_v40 = vpop.f32.mrb[78].mxu1  ;;  %v5488_v57 = vpop.permute.xlu1 %2845 }
 0x2d1   :  { %v3789_v45 = vpop.f32.mrb[79].mxu1  ;;  %v5498_v60 = vpop.permute.xlu0 %2641 }
 0x2d2   :  { %v5479_v8 = vadd.f32 %v3787_v24, %v5359_v19  ;;  %v3790_v63 = vadd.f32 %v3789_v45, %v3788_v40  ;;  %v2590_v19 = vrot.slane %v2582_v51, %v4831_v1  ;;  %v2782_v40 = vrot.slane %v5431_v17, %v4831_v1 }
 0x2d4   :  { %5662 = vst [vmem:[#allocation4_spill] sm:$0xff] %v5479_v8  ;;  %v5482_v61 = vadd.f32 %v3790_v63, %v5363_v44  ;;  %v2770_v44 = vrot.slane %v5429_v22, %v4831_v1  ;;  %v3513_v48 = vcombine.low %v2578_v29, %v2590_v19  ;;  %v2614_v29 = vrot.slane %v5458_v18, %v4831_v1 }
 0x2d6   :  { %5663 = vst [vmem:[#allocation5_spill] sm:$0xff] %v5482_v61  ;;  %v3791_v42 = vpop.f32.mrb[80].mxu1  ;;  %v3047_v22 = vadd.bf16 %v3513_v48, %v2551_v3 }
 0x2d7   :  { %v3792_v53 = vpop.f32.mrb[81].mxu1 }
 0x2d8   :  { %v3793_v56 = vadd.f32 %v3792_v53, %v3791_v42  ;;  %v3794_v0 = vpop.f32.mrb[82].mxu1  ;;  %v3521_v42 = vcombine.low %v2770_v44, %v2782_v40  ;;  %v5500_v53 = vpop.permute.xlu1 %2653  ;;  %v3063_v48 = vmax.bf16 %v5651_v11, %v3047_v22 }
 0x2d9   :  { %v3795_v24 = vpop.f32.mrb[83].mxu1 }
 0x2da   :  { %v2457_v45 = vadd.f32 %v3793_v56, %v5367_v46  ;;  %v3796_v63 = vadd.f32 %v3795_v24, %v3794_v0  ;;  %v2794_v46 = vrot.slane %v5446_v31, %v4831_v1  ;;  %v2806_v56 = vrot.slane %v5448_v13, %v4831_v1 }
 0x2dc   :  { %v2460_v43 = vadd.f32 %v3796_v63, %v5369_v38  ;;  %v2602_v38 = vrot.slane %v5456_v47, %v4831_v1  ;;  %v5518_v31 = vpop.permute.xlu1 %2869  ;;  %v3522_v18 = vcombine.low %v2794_v46, %v2806_v56  ;;  %v2638_v63 = vrot.slane %v5476_v36, %v4831_v1 }
 0x2de   :  { %v2559_v50 = vpack.c.bf16 %v2460_v43, %v2457_v45  ;;  %v3797_v51 = vpop.f32.mrb[84].mxu1  ;;  %v3514_v43 = vcombine.low %v2602_v38, %v2614_v29  ;;  %v2818_v45 = vrot.slane %v5465_v37, %v4831_v1 }
 0x2df   :  { %v3798_v55 = vpop.f32.mrb[85].mxu1 }
 0x2e0   :  { %v3799_v8 = vadd.f32 %v3798_v55, %v3797_v51  ;;  %v3800_v17 = vpop.f32.mrb[86].mxu1  ;;  %v3055_v61 = vadd.bf16 %v3521_v42, %v2559_v50  ;;  %v5515_v55 = vpop.permute.xlu0 %2857  ;;  %v2830_v51 = vrot.slane %v5467_v26, %v4831_v1  ;;  %v5665_v26 = vpack.c.bf16 %v5422_v25, %v5419_v2 }
 0x2e1   :  { %v3801_v0 = vpop.f32.mrb[87].mxu1  ;;  %v2854_v2 = vrot.slane %v5488_v57, %v4831_v1  ;;  %v5666_v57 = vpack.c.bf16 %v5434_v27, %v5427_v14 }
 0x2e2   :  { %v2465_v39 = vadd.f32 %v3799_v8, %v5371_v33  ;;  %v3802_v4 = vadd.f32 %v3801_v0, %v3800_v17  ;;  %v3071_v3 = vmax.bf16 %v5651_v11, %v3055_v61  ;;  %v5664_v33 = vpack.c.bf16 %v5414_v54, %v5411_v30  ;;  %v2678_v30 = vpop.permute.xlu1 %2677 }
 0x2e3   :  { %v3523_v38 = vcombine.low %v2818_v45, %v2830_v51  ;;  %v2686_v51 = vrot.slane %v2678_v30, %v4831_v1 }
 0x2e4   :  { %v2468_v47 = vadd.f32 %v3802_v4, %v5373_v7  ;;  %3839 = vmatprep.subr.bf16.mxu0 %v3071_v3  ;;  %v3048_v13 = vadd.bf16 %v3514_v43, %v5664_v33  ;;  %v2626_v7 = vrot.slane %v5474_v35, %v4831_v1  ;;  %v2666_v42 = vpop.permute.xlu0 %2665  ;;  %v2662_v43 = vrot.slane %v5500_v53, %v4831_v1 }
 0x2e5   :  { %3840 = vmatpush3.bf16.msra.mxu0 %v3063_v48 }
 0x2e6   :  { %v2560_v19 = vpack.c.bf16 %v2468_v47, %v2465_v39  ;;  %v3803_v24 = vpop.f32.mrb[88].mxu1  ;;  %v3064_v46 = vmax.bf16 %v5651_v11, %v3048_v13  ;;  %v3515_v35 = vcombine.low %v2626_v7, %v2638_v63  ;;  %v5541_v39 = vpop.permute.xlu1 %2893  ;;  %v2650_v47 = vrot.slane %v5498_v60, %v4831_v1 }
 0x2e7   :  { %v3804_v8 = vpop.f32.mrb[89].mxu1 }
 0x2e8   :  { %v3805_v61 = vadd.f32 %v3804_v8, %v3803_v24  ;;  %v3806_v44 = vpop.f32.mrb[90].mxu1  ;;  %v3056_v40 = vadd.bf16 %v3522_v18, %v2560_v19  ;;  %v5536_v0 = vpop.permute.xlu0 %2881  ;;  %v3049_v56 = vadd.bf16 %v3515_v35, %v5665_v26 }
 0x2e9   :  { %v3807_v50 = vpop.f32.mrb[91].mxu1 }
 0x2ea   :  { %v2473_v54 = vadd.f32 %v3805_v61, %v5375_v28  ;;  %v3808_v22 = vadd.f32 %v3807_v50, %v3806_v44  ;;  %v3072_v17 = vmax.bf16 %v5651_v11, %v3056_v40  ;;  %v3065_v33 = vmax.bf16 %v5651_v11, %v3049_v56  ;;  %v2702_v61 = vpop.permute.xlu1 %2701 }
 0x2eb   :  { %v2866_v50 = vrot.slane %v5515_v55, %v4831_v1 }
 0x2ec   :  { %v2476_v37 = vadd.f32 %v3808_v22, %v5377_v9  ;;  %3841 = vmatprep.subr.bf16.mxu0 %v3072_v17  ;;  %v2842_v9 = vrot.slane %v5486_v16, %v4831_v1  ;;  %v3516_v16 = vcombine.low %v2650_v47, %v2662_v43  ;;  %v2690_v8 = vpop.permute.xlu0 %2689  ;;  %v2878_v22 = vrot.slane %v5518_v31, %v4831_v1 }
 0x2ed   :  { %3842 = vmatpush3.bf16.msra.mxu0 %v3064_v46  ;;  %v5667_v31 = vpack.c.bf16 %v5442_v23, %v5439_v34  ;;  %v2902_v47 = vrot.slane %v5541_v39, %v4831_v1  ;;  %v5668_v39 = vpack.c.bf16 %v5454_v15, %v5451_v58 }
 0x2ee   :  { %v2561_v36 = vpack.c.bf16 %v2476_v37, %v2473_v54  ;;  %v3809_v29 = vpop.f32.mrb[92].mxu1  ;;  %v3524_v60 = vcombine.low %v2842_v9, %v2854_v2  ;;  %v3050_v40 = vadd.bf16 %v3516_v16, %v5666_v57  ;;  %v2918_v35 = vpop.permute.xlu1 %2917 }
 0x2ef   :  { %v3810_v28 = vpop.f32.mrb[93].mxu1 }
 0x2f0   :  { %v3811_v4 = vadd.f32 %v3810_v28, %v3809_v29  ;;  %v3812_v3 = vpop.f32.mrb[94].mxu1  ;;  %v3057_v48 = vadd.bf16 %v3523_v38, %v2561_v36  ;;  %v2906_v27 = vpop.permute.xlu0 %2905  ;;  %v3066_v37 = vmax.bf16 %v5651_v11, %v3050_v40 }
 0x2f1   :  { %v3813_v18 = vpop.f32.mrb[95].mxu1 }
 0x2f2   :  { %v2481_v25 = vadd.f32 %v3811_v4, %v5379_v21  ;;  %v3814_v19 = vadd.f32 %v3813_v18, %v3812_v3  ;;  %v3073_v24 = vmax.bf16 %v5651_v11, %v3057_v48  ;;  %v2890_v4 = vrot.slane %v5536_v0, %v4831_v1  ;;  %v2726_v43 = vpop.permute.xlu1 %2725 }
 0x2f3   :  { %v2698_v3 = vrot.slane %v2690_v8, %v4831_v1  ;;  %v2734_v57 = vrot.slane %v2726_v43, %v4831_v1  ;;  %v4159_v43 = vld [vmem:[%s5641_s5 + $0x20] ss:$8 sps:$4 sm:$0xff]  }
 0x2f4   :  { %v2484_v13 = vadd.f32 %v3814_v19, %v5381_v41  ;;  %3843 = vmatprep.subr.bf16.mxu0 %v3073_v24  ;;  %v2674_v41 = vrot.slane %v2666_v42, %v4831_v1  ;;  %v3525_v42 = vcombine.low %v2866_v50, %v2878_v22  ;;  %v2714_v48 = vpop.permute.xlu0 %2713  ;;  %v3526_v19 = vcombine.low %v2890_v4, %v2902_v47  ;;  %v5671_v4 = vld [vmem:[#allocation4_spill] sm:$0xff] }
 0x2f5   :  { %3844 = vmatpush3.bf16.msra.mxu0 %v3065_v33  ;;  %v4156_v47 = vld [vmem:[%s5641_s5 + $0x10] ss:$8 sps:$4 sm:$0xff]  }
 0x2f6   :  { %v2562_v53 = vpack.c.bf16 %v2484_v13, %v2481_v25  ;;  %v3815_v44 = vpop.f32.mrb[96].mxu1  ;;  %v3517_v55 = vcombine.low %v2674_v41, %v2686_v51 }
 0x2f7   :  { %v3816_v21 = vpop.f32.mrb[97].mxu1 }
 0x2f8   :  { %v3817_v45 = vadd.f32 %v3816_v21, %v3815_v44  ;;  %v3818_v7 = vpop.f32.mrb[98].mxu1  ;;  %v3058_v63 = vadd.bf16 %v3524_v60, %v2562_v53  ;;  %v3051_v29 = vadd.bf16 %v3517_v55, %v5667_v31  ;;  %v2930_v13 = vpop.permute.xlu0 %2929  ;;  %v2914_v44 = vrot.slane %v2906_v27, %v4831_v1 }
 0x2f9   :  { %v3819_v54 = vpop.f32.mrb[99].mxu1  ;;  %v2926_v21 = vrot.slane %v2918_v35, %v4831_v1 }
 0x2fa   :  { %v2489_v17 = vadd.f32 %v3817_v45, %v5383_v20  ;;  %v3820_v46 = vadd.f32 %v3819_v54, %v3818_v7  ;;  %v3074_v14 = vmax.bf16 %v5651_v11, %v3058_v63  ;;  %v3067_v2 = vmax.bf16 %v5651_v11, %v3051_v29 }
 0x2fb   :  { %v3527_v51 = vcombine.low %v2914_v44, %v2926_v21 }
 0x2fc   :  { %v2492_v38 = vadd.f32 %v3820_v46, %v5385_v5  ;;  %3845 = vmatprep.subr.bf16.mxu0 %v3074_v14  ;;  %v2710_v5 = vrot.slane %v2702_v61, %v4831_v1  ;;  %v2738_v41 = vpop.permute.xlu0 %2737  ;;  %v5669_v46 = vpack.c.bf16 %v5470_v49, %v5463_v6 }
 0x2fd   :  { %3846 = vmatpush3.bf16.msra.mxu0 %v3066_v37 }
 0x2fe   :  { %v2563_v30 = vpack.c.bf16 %v2492_v38, %v2489_v17  ;;  %v3821_v36 = vpop.f32.mrb[100].mxu1  ;;  %v3518_v0 = vcombine.low %v2698_v3, %v2710_v5  ;;  %v2938_v38 = vrot.slane %v2930_v13, %v4831_v1 }
 0x2ff   :  { %v3822_v20 = vpop.f32.mrb[101].mxu1 }
 0x300   :  { %v3823_v26 = vadd.f32 %v3822_v20, %v3821_v36  ;;  %v3824_v56 = vpop.f32.mrb[102].mxu1  ;;  %v3059_v28 = vadd.bf16 %v3525_v42, %v2563_v30  ;;  %v3052_v16 = vadd.bf16 %v3518_v0, %v5668_v39 }
 0x301   :  { %v3825_v9 = vpop.f32.mrb[103].mxu1 }
 0x302   :  { %v2497_v34 = vadd.f32 %v3823_v26, %v5387_v59  ;;  %v3826_v23 = vadd.f32 %v3825_v9, %v3824_v56  ;;  %v3075_v18 = vmax.bf16 %v5651_v11, %v3059_v28  ;;  %v2942_v59 = vpop.permute.xlu1 %2941  ;;  %v3068_v15 = vmax.bf16 %v5651_v11, %v3052_v16  ;;  %v5670_v28 = vld [vmem:[#allocation5_spill] sm:$0xff]  ;;  %v4151_v9 = vld [vmem:[%s5641_s5] ss:$8 sps:$4 sm:$0xff]  }
 0x303   :  { %v2950_v30 = vrot.slane %v2942_v59, %v4831_v1  ;;  %v5672_v3 = vpack.c.bf16 %v5670_v28, %v5671_v4 }
 0x304   :  { %v2500_v25 = vadd.f32 %v3826_v23, %v5389_v10  ;;  %3847 = vmatprep.subr.bf16.mxu0 %v3075_v18  ;;  %v2722_v10 = vrot.slane %v2714_v48, %v4831_v1  ;;  %v4162_v23 = vld [vmem:[%s5641_s5 + $0x30] ss:$8 sps:$4 sm:$0xff]   ;;  %v3990_v18 = vpop.permute.xlu0 %3989 }
 0x305   :  { %3848 = vmatpush3.bf16.msra.mxu0 %v3067_v2  ;;  %v3528_v26 = vcombine.low %v2938_v38, %v2950_v30 }
 0x306   :  { %v2564_v24 = vpack.c.bf16 %v2500_v25, %v2497_v34  ;;  %v3827_v33 = vpop.f32.mrb[104].mxu1  ;;  %v3519_v50 = vcombine.low %v2722_v10, %v2734_v57  ;;  %v2750_v54 = vpop.permute.xlu1 %2749  ;;  %v4160_v34 = vld [vmem:[%s5641_s5 + $0x34] ss:$8 sps:$4 sm:$0xff]  }
 0x307   :  { %v3828_v8 = vpop.f32.mrb[105].mxu1  ;;  %v2758_v55 = vrot.slane %v2750_v54, %v4831_v1 }
 0x308   :  { %v3829_v60 = vadd.f32 %v3828_v8, %v3827_v33  ;;  %v3830_v61 = vpop.f32.mrb[106].mxu1  ;;  %v3060_v53 = vadd.bf16 %v3526_v19, %v2564_v24  ;;  %v3053_v14 = vadd.bf16 %v3519_v50, %v5669_v46  ;;  %v4000_v16 = vpop.permute.xlu0 %3999 }
 0x309   :  { %v3831_v40 = vpop.f32.mrb[107].mxu1 }
 0x30a   :  { %v2505_v45 = vadd.f32 %v3829_v60, %v5391_v12  ;;  %v3832_v7 = vadd.f32 %v3831_v40, %v3830_v61  ;;  %v3076_v58 = vmax.bf16 %v5651_v11, %v3060_v53  ;;  %v3069_v6 = vmax.bf16 %v5651_v11, %v3053_v14  ;;  %v3995_v39 = vpop.permute.xlu1 %3994 }
 0x30b   :  { %v4002_v60 = vunpack.i.h.bf16 %v4000_v16  ;;  %v4001_v61 = vunpack.i.l.bf16 %v4000_v16 }
 0x30c   :  { %v2508_v63 = vadd.f32 %v3832_v7, %v5393_v32  ;;  %3849 = vmatprep.subr.bf16.mxu0 %v3076_v58  ;;  %v2746_v32 = vrot.slane %v2738_v41, %v4831_v1  ;;  %v4010_v41 = vpop.permute.xlu0 %4009 }
 0x30d   :  { %3850 = vmatpush3.bf16.msra.mxu0 %v3068_v15 }
 0x30e   :  { %v2565_v22 = vpack.c.bf16 %v2508_v63, %v2505_v45  ;;  %v3833_v17 = vpop.f32.mrb[108].mxu1  ;;  %v3520_v20 = vcombine.low %v2746_v32, %v2758_v55  ;;  %v4005_v7 = vpop.permute.xlu1 %4004 }
 0x30f   :  { %v3834_v12 = vpop.f32.mrb[109].mxu1 }
 0x310   :  { %v3835_v27 = vadd.f32 %v3834_v12, %v3833_v17  ;;  %v3836_v37 = vpop.f32.mrb[110].mxu1  ;;  %v3061_v35 = vadd.bf16 %v3527_v51, %v2565_v22  ;;  %v3054_v5 = vadd.bf16 %v3520_v20, %v5672_v3  ;;  %v4007_v51 = vunpack.i.h.bf16 %v4005_v7 }
 0x311   :  { %v3837_v42 = vpop.f32.mrb[111].mxu1  ;;  %v4012_v17 = vunpack.i.h.bf16 %v4010_v41 }
 0x312   :  { %v2513_v36 = vadd.f32 %v3835_v27, %v5395_v52  ;;  %v3838_v31 = vadd.f32 %v3837_v42, %v3836_v37  ;;  %v3077_v29 = vmax.bf16 %v5651_v11, %v3061_v35  ;;  %v3070_v52 = vmax.bf16 %v5651_v11, %v3054_v5  ;;  %v4015_v55 = vpop.permute.xlu1 %4014 }
 0x314   :  { %v2516_v49 = vadd.f32 %v3838_v31, %v5397_v62  ;;  %3851 = vmatprep.subr.bf16.mxu0 %v3077_v29  ;;  %v4154_v62 = vld [vmem:[%s5641_s5 + $0x14] ss:$8 sps:$4 sm:$0xff]   ;;  %v4020_v29 = vpop.permute.xlu0 %4019 }
 0x315   :  { %3852 = vmatpush3.bf16.msra.mxu0 %v3069_v6  ;;  %v4017_v6 = vunpack.i.h.bf16 %v4015_v55 }
 0x316   :  { %v2566_v56 = vpack.c.bf16 %v2516_v49, %v2513_v36 }
 0x318   :  { %v3062_v48 = vadd.bf16 %v3528_v26, %v2566_v56  ;;  %v4022_v26 = vunpack.i.h.bf16 %v4020_v29 }
 0x31a   :  { %v3078_v1 = vmax.bf16 %v5651_v11, %v3062_v48  ;;  %v4157_v11 = vld [vmem:[%s5641_s5 + $0x24] ss:$8 sps:$4 sm:$0xff]  }
 0x31c   :  { %3853 = vmatprep.subr.bf16.mxu0 %v3078_v1 }
 0x31d   :  { %3854 = vmatpush3.bf16.msra.mxu0 %v3070_v52 }
 0x320   :  { %3216 = vmatmul.mubr.bf16.vlgmr.msra.gmra.mrb[80].mxu0 %v4151_v9 }
 0x321   :  { %3223 = vmatprep.mubr.bf16.mxu0 %v4154_v62 }
 0x328   :  { %3224 = vmatmul.mubr.bf16.gmra.mrb[84].mxu0 %v4156_v47 }
 0x329   :  { %3231 = vmatprep.mubr.bf16.mxu0 %v4157_v11 }
 0x330   :  { %3232 = vmatmul.mubr.bf16.gmra.mrb[88].mxu0 %v4159_v43 }
 0x331   :  { %3239 = vmatprep.mubr.bf16.mxu0 %v4160_v34 }
 0x338   :  { %3240 = vmatmul.mubr.bf16.gmra.mrb[92].mxu0 %v4162_v23  ;;  %v3305_v23 = vpop.permute.xlu1 %3304 }
 0x3f3   :  { %v3855_v2 = vpop.f32.mrb[80].mxu0 }
 0x3f4   :  { %v3856_v25 = vpop.f32.mrb[81].mxu0 }
 0x3f5   :  { %v3857_v0 = vadd.f32 %v3856_v25, %v3855_v2  ;;  %v3858_v19 = vpop.f32.mrb[82].mxu0  ;;  %v3310_v25 = vpop.permute.xlu0 %3309 }
 0x3f6   :  { %v3859_v24 = vpop.f32.mrb[83].mxu0 }
 0x3f7   :  { %v4163_v33 = vadd.low.f32.bf16 %v3857_v0, %v3990_v18  ;;  %v3860_v13 = vadd.f32 %v3859_v24, %v3858_v19  ;;  %v4173_v24 = vmov 269488144  }
 0x3f9   :  { %v3248_v8 = vmax.f32 %v4163_v33, 0.0  ;;  %v4164_v59 = vadd.high.f32.bf16 %v3860_v13, %v3990_v18  ;;  %v3341_v33 = vunpack.c.l.s4 %v4173_v24 }
 0x3fb   :  { %v3249_v53 = vmax.f32 %v4164_v59, 0.0  ;;  %v3861_v44 = vpop.f32.mrb[84].mxu0  ;;  %v3312_v57 = vmul.f32 %v4001_v61, %v3248_v8  ;;  %v3342_v16 = vunpack.c.0.s8 %v3341_v33 }
 0x3fc   :  { %v3862_v10 = vpop.f32.mrb[85].mxu0 }
 0x3fd   :  { %v3313_v40 = vmul.f32 %v4002_v60, %v3249_v53  ;;  %v3863_v21 = vadd.f32 %v3862_v10, %v3861_v44  ;;  %v3864_v45 = vpop.f32.mrb[86].mxu0  ;;  %v5673_v60 = vld [vmem:[#allocation3_spill] sm:$0xff]  ;;  %v3338_v44 = vpop.permute.xlu1 %3337 }
 0x3fe   :  { %v3865_v58 = vpop.f32.mrb[87].mxu0  ;;  %v3345_v61 = vsub.s32 %v3342_v16, %v5673_v60 }
 0x3ff   :  { %v3320_v15 = vadd.f32 %v3313_v40, %v3312_v57  ;;  %v4165_v63 = vadd.low.f32.bf16 %v3863_v21, %v3995_v39  ;;  %v3866_v50 = vadd.f32 %v3865_v58, %v3864_v45 }
 0x400   :  { %v3346_v57 = vrot.slane %v3338_v44, %v3345_v61 }
 0x401   :  { %v3250_v54 = vmax.f32 %v4165_v63, 0.0  ;;  %v4166_v22 = vadd.high.f32.bf16 %v3866_v50, %v3995_v39 }
 0x403   :  { %v3314_v46 = vmul.f32 %v4007_v51, %v3250_v54  ;;  %v3251_v14 = vmax.f32 %v4166_v22, 0.0  ;;  %v3867_v12 = vpop.f32.mrb[88].mxu0 }
 0x404   :  { %v3868_v27 = vpop.f32.mrb[89].mxu0 }
 0x405   :  { %v3321_v37 = vadd.f32 %v3320_v15, %v3314_v46  ;;  %v3315_v35 = vmul.f32 %v4012_v17, %v3251_v14  ;;  %v3869_v38 = vadd.f32 %v3868_v27, %v3867_v12  ;;  %v3870_v32 = vpop.f32.mrb[90].mxu0 }
 0x406   :  { %v3871_v42 = vpop.f32.mrb[91].mxu0 }
 0x407   :  { %v3322_v30 = vadd.f32 %v3321_v37, %v3315_v35  ;;  %v4167_v36 = vadd.low.f32.bf16 %v3869_v38, %v4005_v7  ;;  %v3872_v31 = vadd.f32 %v3871_v42, %v3870_v32 }
 0x409   :  { %v3252_v49 = vmax.f32 %v4167_v36, 0.0  ;;  %v4168_v20 = vadd.low.f32.bf16 %v3872_v31, %v4010_v41 }
 0x40b   :  { %v3316_v56 = vmul.f32 %v4017_v6, %v3252_v49  ;;  %v3253_v28 = vmax.f32 %v4168_v20, 0.0  ;;  %v3873_v4 = vpop.f32.mrb[92].mxu0 }
 0x40c   :  { %v3874_v3 = vpop.f32.mrb[93].mxu0 }
 0x40d   :  { %v3323_v5 = vadd.f32 %v3322_v30, %v3316_v56  ;;  %v3317_v48 = vmul.f32 %v4022_v26, %v3253_v28  ;;  %v3875_v1 = vadd.f32 %v3874_v3, %v3873_v4  ;;  %v3876_v52 = vpop.f32.mrb[94].mxu0 }
 0x40e   :  { %v3877_v9 = vpop.f32.mrb[95].mxu0 }
 0x40f   :  { %v3324_v62 = vadd.f32 %v3323_v5, %v3317_v48  ;;  %v4169_v47 = vadd.low.f32.bf16 %v3875_v1, %v4015_v55  ;;  %v3878_v11 = vadd.f32 %v3877_v9, %v3876_v52 }
 0x411   :  { %v3254_v43 = vmax.f32 %v4169_v47, 0.0  ;;  %v4170_v34 = vadd.low.f32.bf16 %v3878_v11, %v4020_v29 }
 0x413   :  { %v3318_v18 = vmul.f32 %v3305_v23, %v3254_v43  ;;  %v3255_v2 = vmax.f32 %v4170_v34, 0.0 }
 0x415   :  { %v3325_v0 = vadd.f32 %v3324_v62, %v3318_v18  ;;  %v3319_v19 = vmul.f32 %v3310_v25, %v3255_v2 }
 0x417   :  { %v3326_v13 = vadd.f32 %v3325_v0, %v3319_v19 }
 0x419   :  { %v3327_v39 = vrot.slane %v3326_v13, 4 }
 0x41b   :  { %v3328_v8 = vadd.f32 %v3327_v39, %v3326_v13 }
 0x41d   :  { %v3329_v59 = vrot.slane %v3328_v8, 2 }
 0x41f   :  { %v3330_v53 = vadd.f32 %v3329_v59, %v3328_v8 }
 0x421   :  { %v3331_v10 = vrot.slane %v3330_v53, 1 }
 0x423   :  { %v3332_v40 = vadd.f32 %v3331_v10, %v3330_v53 }
 0x425   :  { %v3347_v21 = vadd.f32 %v3346_v57, %v3332_v40 }
 0x427   :  { %3348 = vst [vmem:[%s5642_s9] sm:$0x1] %v3347_v21 }

</bundles_post_ra>
